<compile_context>
chip_gen: v7x
topology: tpu7x:2x2x1
jax: 0.10.0
libtpu: 0.0.40
codegen_flags: <defaults>
</compile_context>

<pallas_src>
import jax
import jax.numpy as jnp
from jax.experimental import pallas as pl
from jax.experimental.pallas import tpu as pltpu

KH = KW = 3      # kernel_size=3
PAD = 1          # padding=1
EPS = 1e-5       # nn.BatchNorm2d default eps
LANE = 128


def _round_up(x, m):
    return (x + m - 1) // m * m


def conv_stats_kernel(x_hbm, w_ref, o_ref, s_ref, sq_ref, xbuf):
    """Conv 3x3 (no bias) + per-tile BN partial stats for one (n, row-tile).

    x_hbm : (N, H+2, W+2, Cin_p)  zero-padded NHWC input, left in HBM (pl.ANY)
    w_ref : (KH*KW*Cin_p, Cout_p) flattened conv weights (VMEM, loaded once)
    o_ref : (1, 1, TH*W, Cout_p)  conv output tile (lane- and sublane-dense)
    s_ref : (1, 1, 1, Cout_p)     per-tile channel sums
    sq_ref: (1, 1, 1, Cout_p)     per-tile channel sums of squares
    xbuf  : (TH+2, W+2, Cin_p)    VMEM scratch holding the halo'd input rows
    """
    n = pl.program_id(0)
    h = pl.program_id(1)
    TH = xbuf.shape[0] - 2 * PAD
    W = xbuf.shape[1] - 2 * PAD
    Cin_p = xbuf.shape[2]
    Cout_p = o_ref.shape[-1]

    # Manual halo DMA: rows [h*TH, h*TH + TH + 2) of this sample's padded input.
    row0 = pl.multiple_of(h * TH, TH)
    pltpu.sync_copy(x_hbm.at[n, pl.ds(row0, TH + 2 * PAD)], xbuf)

    # im2col: concatenate the 9 shifted windows along the lane (channel) axis,
    # then a single MXU matmul with contraction 9*Cin_p.
    xb = xbuf[...]
    taps = [xb[kh:kh + TH, kw:kw + W, :] for kh in range(KH) for kw in range(KW)]
    patches = jnp.concatenate(taps, axis=-1).reshape(TH * W, KH * KW * Cin_p)

    # Conv bias intentionally omitted: with training-mode BatchNorm it is
    # exactly cancelled by the mean subtraction, so the output is unchanged.
    y = jnp.dot(patches, w_ref[...], preferred_element_type=jnp.float32)

    # One-pass partial BN statistics for this tile (per output channel).
    s_ref[...] = jnp.sum(y, axis=0, keepdims=True).reshape(1, 1, 1, Cout_p)
    sq_ref[...] = jnp.sum(y * y, axis=0, keepdims=True).reshape(1, 1, 1, Cout_p)

    o_ref[...] = y.reshape(1, 1, TH * W, Cout_p)


def bn_relu_kernel(y_ref, scale_ref, shift_ref, o_ref):
    """Folded BN (y*scale + shift) + ReLU, purely elementwise per tile."""
    o_ref[...] = jnp.maximum(y_ref[...] * scale_ref[...] + shift_ref[...], 0.0)


@jax.jit
def conv_block_forward(x_nchw, w, b, gamma, beta):
    """x_nchw: (N, Cin, H, W) -> (N, Cout, H, W), matching ConvBlock.forward
    (Conv2d 3x3/s1/p1 -> BatchNorm2d with batch stats -> ReLU)."""
    del b  # conv bias is a mathematical no-op under training-mode BatchNorm

    N, Cin, H, W = x_nchw.shape
    Cout = w.shape[-1]
    Cin_p = _round_up(Cin, LANE)
    Cout_p = _round_up(Cout, LANE)

    # Row-tile height. Per-tile VMEM use is a few 100 KB at toy channel counts
    # and stays well under v7x's 64 MiB (and v5e/v6e's 128 MiB) for realistic
    # UNet shapes; shrink TH further if W*C grows very large.
    TH = 8 if H % 8 == 0 else H
    nH = H // TH
    grid = (N, nH)

    # Layout plumbing (NCHW boundary like nn.Conv2d): NCHW -> NHWC, pad the
    # channel axes to 128-lane multiples and the spatial dims for padding=1.
    # TODO(synk): accept/produce NHWC at the model level and fold the zero-pad
    # into the kernel to avoid these HBM-side transposes/pads.
    x_nhwc = jnp.transpose(x_nchw, (0, 2, 3, 1))
    x_pad = jnp.pad(x_nhwc, ((0, 0), (PAD, PAD), (PAD, PAD), (0, Cin_p - Cin)))

    w_p = jnp.pad(w, ((0, 0), (0, 0), (0, Cin_p - Cin), (0, Cout_p - Cout)))
    w_flat = w_p.reshape(KH * KW * Cin_p, Cout_p)
    gamma_p = jnp.pad(gamma, (0, Cout_p - Cout))
    beta_p = jnp.pad(beta, (0, Cout_p - Cout))

    # ---- Phase 1: conv + per-tile partial BN statistics -------------------
    y_conv, s_part, sq_part = pl.pallas_call(
        conv_stats_kernel,
        out_shape=(
            jax.ShapeDtypeStruct((N, nH, TH * W, Cout_p), jnp.float32),
            jax.ShapeDtypeStruct((N, nH, 1, Cout_p), jnp.float32),
            jax.ShapeDtypeStruct((N, nH, 1, Cout_p), jnp.float32),
        ),
        grid_spec=pltpu.PrefetchScalarGridSpec(
            num_scalar_prefetch=0,
            grid=grid,
            in_specs=[
                pl.BlockSpec(memory_space=pl.ANY),  # padded input stays in HBM
                pl.BlockSpec((KH * KW * Cin_p, Cout_p), lambda n, h: (0, 0)),
            ],
            out_specs=(
                pl.BlockSpec((1, 1, TH * W, Cout_p), lambda n, h: (n, h, 0, 0)),
                pl.BlockSpec((1, 1, 1, Cout_p), lambda n, h: (n, h, 0, 0)),
                pl.BlockSpec((1, 1, 1, Cout_p), lambda n, h: (n, h, 0, 0)),
            ),
            scratch_shapes=[
                pltpu.VMEM((TH + 2 * PAD, W + 2 * PAD, Cin_p), jnp.float32),
            ],
        ),
        compiler_params=pltpu.CompilerParams(
            dimension_semantics=("parallel", "parallel")),
    )(x_pad, w_flat)

    # Tiny per-channel reduction + folded BN affine, computed once.
    cnt = jnp.float32(N * H * W)
    mean = jnp.sum(s_part, axis=(0, 1, 2)) / cnt
    var = jnp.maximum(jnp.sum(sq_part, axis=(0, 1, 2)) / cnt - mean * mean, 0.0)
    inv = jax.lax.rsqrt(var + EPS)
    scale = (gamma_p * inv).reshape(1, Cout_p)
    shift = (beta_p - mean * gamma_p * inv).reshape(1, Cout_p)

    # ---- Phase 2: normalize + ReLU, in place over the conv buffer ---------
    out_p = pl.pallas_call(
        bn_relu_kernel,
        out_shape=jax.ShapeDtypeStruct((N, nH, TH * W, Cout_p), jnp.float32),
        grid_spec=pltpu.PrefetchScalarGridSpec(
            num_scalar_prefetch=0,
            grid=grid,
            in_specs=[
                pl.BlockSpec((1, 1, TH * W, Cout_p), lambda n, h: (n, h, 0, 0)),
                pl.BlockSpec((1, Cout_p), lambda n, h: (0, 0)),
                pl.BlockSpec((1, Cout_p), lambda n, h: (0, 0)),
            ],
            out_specs=pl.BlockSpec((1, 1, TH * W, Cout_p),
                                   lambda n, h: (n, h, 0, 0)),
        ),
        compiler_params=pltpu.CompilerParams(
            dimension_semantics=("parallel", "parallel")),
        input_output_aliases={0: 0},
    )(y_conv, scale, shift)

    # Layout plumbing back: (N, nH, TH*W, Cout_p) -> (N, H, W, Cout) -> NCHW.
    out_nhwc = out_p.reshape(N, H, W, Cout_p)[..., :Cout]
    return jnp.transpose(out_nhwc, (0, 3, 1, 2))


if __name__ == "__main__":
    # small shapes consistent with the module
    N, Cin, Cout, H, W = 2, 4, 8, 16, 16

    key = jax.random.PRNGKey(0)
    kx, kw, kb = jax.random.split(key, 3)

    x = jax.random.normal(kx, (N, Cin, H, W), dtype=jnp.float32)

    # deterministic parameter init (Conv2d weight/bias; BatchNorm2d defaults)
    fan_in = Cin * KH * KW
    bound = 1.0 / (fan_in ** 0.5)
    w = jax.random.uniform(kw, (KH, KW, Cin, Cout), jnp.float32, -bound, bound)
    b = jax.random.uniform(kb, (Cout,), jnp.float32, -bound, bound)
    gamma = jnp.ones((Cout,), jnp.float32)   # BN weight init
    beta = jnp.zeros((Cout,), jnp.float32)   # BN bias init

    out = conv_block_forward(x, w, b, gamma, beta)
    jax.block_until_ready(out)
    assert out.shape == (N, Cout, H, W)

    # Pure-JAX reference: conv(+bias) -> training-mode BN -> ReLU.
    x_nhwc = jnp.transpose(x, (0, 2, 3, 1))
    ref = jax.lax.conv_general_dilated(
        x_nhwc, w, window_strides=(1, 1), padding=((PAD, PAD), (PAD, PAD)),
        dimension_numbers=("NHWC", "HWIO", "NHWC")) + b
    mu = jnp.mean(ref, axis=(0, 1, 2))
    vr = jnp.mean((ref - mu) ** 2, axis=(0, 1, 2))
    ref = jnp.maximum((ref - mu) * jax.lax.rsqrt(vr + EPS) * gamma + beta, 0.0)
    ref = jnp.transpose(ref, (0, 3, 1, 2))
    err = float(jnp.max(jnp.abs(out - ref)))
    assert err < 1e-3, f"max abs error vs reference: {err}"

    print("KERNEL_OK")
</pallas_src>

<mosaic_0001>
module attributes {stable_mosaic.version = 11 : i64} {
  func.func @conv_stats_kernel(%arg0: i32, %arg1: i32, %arg2: memref<2x18x18x128xf32, #tpu.memory_space<any>>, %arg3: memref<1152x128xf32, #tpu.memory_space<vmem>>, %arg4: memref<1x1x128x128xf32, #tpu.memory_space<vmem>>, %arg5: memref<1x1x1x128xf32, #tpu.memory_space<vmem>>, %arg6: memref<1x1x1x128xf32, #tpu.memory_space<vmem>>, %arg7: memref<10x18x128xf32, #tpu.memory_space<vmem>>) attributes {dimension_semantics = [#tpu.dimension_semantics<parallel>, #tpu.dimension_semantics<parallel>], iteration_bounds = array<i64: 2, 2>, scalar_prefetch = 0 : i64, scratch_operands = 1 : i64, tpu.core_type = #tpu.core_type<tc>, window_params = [{}, {pipeline_mode = #tpu.pipeline_mode<synchronous>, transform_indices = @transform_1, window_bounds = array<i64: 1152, 128>}, {transform_indices = @transform_2, window_bounds = array<i64: 1, 1, 128, 128>}, {transform_indices = @transform_3, window_bounds = array<i64: 1, 1, 1, 128>}, {transform_indices = @transform_4, window_bounds = array<i64: 1, 1, 1, 128>}]} {
    %c8_i32 = arith.constant 8 : i32
    %0 = arith.muli %arg1, %c8_i32 : i32
    %1 = tpu.assume_multiple %0, 8 : i32
    "tpu.region"() ({
      %27 = tpu.sem_alloc : memref<!tpu.dma_semaphore, #tpu.memory_space<semaphore_mem>>
      %c0_i32 = arith.constant 0 : i32
      %c0_i32_18 = arith.constant 0 : i32
      %28 = tpu.memref_slice %arg2[%arg0, %1, %c0_i32, %c0_i32_18] : memref<2x18x18x128xf32, #tpu.memory_space<any>> -> memref<1x10x18x128xf32, #tpu.memory_space<any>>
      %29 = tpu.memref_squeeze %28 : memref<1x10x18x128xf32, #tpu.memory_space<any>> -> memref<10x18x128xf32, #tpu.memory_space<any>>
      tpu.enqueue_dma source(%29 : memref<10x18x128xf32, #tpu.memory_space<any>>) target(%arg7 : memref<10x18x128xf32, #tpu.memory_space<vmem>>) target_semaphore(%27 : memref<!tpu.dma_semaphore, #tpu.memory_space<semaphore_mem>>)
      %c0_i32_19 = arith.constant 0 : i32
      %c0_i32_20 = arith.constant 0 : i32
      %30 = tpu.memref_slice %arg2[%arg0, %1, %c0_i32_19, %c0_i32_20] : memref<2x18x18x128xf32, #tpu.memory_space<any>> -> memref<1x10x18x128xf32, #tpu.memory_space<any>>
      %31 = tpu.memref_squeeze %30 : memref<1x10x18x128xf32, #tpu.memory_space<any>> -> memref<10x18x128xf32, #tpu.memory_space<any>>
      tpu.wait_dma2 semaphore(%27 : memref<!tpu.dma_semaphore, #tpu.memory_space<semaphore_mem>>) src(%31 : memref<10x18x128xf32, #tpu.memory_space<any>>) dst(%arg7 : memref<10x18x128xf32, #tpu.memory_space<vmem>>)
      tpu.yield
    }) : () -> ()
    %c0 = arith.constant 0 : index
    %c0_0 = arith.constant 0 : index
    %c0_1 = arith.constant 0 : index
    %2 = vector.load %arg7[%c0, %c0_0, %c0_1] : memref<10x18x128xf32, #tpu.memory_space<vmem>>, vector<10x18x128xf32>
    %3 = vector.extract_strided_slice %2 {offsets = [0, 0, 0], sizes = [8, 16, 128], strides = [1, 1, 1]} : vector<10x18x128xf32> to vector<8x16x128xf32>
    %4 = vector.extract_strided_slice %2 {offsets = [0, 1, 0], sizes = [8, 16, 128], strides = [1, 1, 1]} : vector<10x18x128xf32> to vector<8x16x128xf32>
    %5 = vector.extract_strided_slice %2 {offsets = [0, 2, 0], sizes = [8, 16, 128], strides = [1, 1, 1]} : vector<10x18x128xf32> to vector<8x16x128xf32>
    %6 = vector.extract_strided_slice %2 {offsets = [1, 0, 0], sizes = [8, 16, 128], strides = [1, 1, 1]} : vector<10x18x128xf32> to vector<8x16x128xf32>
    %7 = vector.extract_strided_slice %2 {offsets = [1, 1, 0], sizes = [8, 16, 128], strides = [1, 1, 1]} : vector<10x18x128xf32> to vector<8x16x128xf32>
    %8 = vector.extract_strided_slice %2 {offsets = [1, 2, 0], sizes = [8, 16, 128], strides = [1, 1, 1]} : vector<10x18x128xf32> to vector<8x16x128xf32>
    %9 = vector.extract_strided_slice %2 {offsets = [2, 0, 0], sizes = [8, 16, 128], strides = [1, 1, 1]} : vector<10x18x128xf32> to vector<8x16x128xf32>
    %10 = vector.extract_strided_slice %2 {offsets = [2, 1, 0], sizes = [8, 16, 128], strides = [1, 1, 1]} : vector<10x18x128xf32> to vector<8x16x128xf32>
    %11 = vector.extract_strided_slice %2 {offsets = [2, 2, 0], sizes = [8, 16, 128], strides = [1, 1, 1]} : vector<10x18x128xf32> to vector<8x16x128xf32>
    %12 = tpu.concatenate %3, %4, %5, %6, %7, %8, %9, %10, %11 in 2 : vector<8x16x128xf32>, vector<8x16x128xf32>, vector<8x16x128xf32>, vector<8x16x128xf32>, vector<8x16x128xf32>, vector<8x16x128xf32>, vector<8x16x128xf32>, vector<8x16x128xf32>, vector<8x16x128xf32> -> vector<8x16x1152xf32>
    %13 = vector.shape_cast %12 : vector<8x16x1152xf32> to vector<128x1152xf32>
    %c0_2 = arith.constant 0 : index
    %c0_3 = arith.constant 0 : index
    %14 = vector.load %arg3[%c0_2, %c0_3] : memref<1152x128xf32, #tpu.memory_space<vmem>>, vector<1152x128xf32>
    %cst = arith.constant dense<0.000000e+00> : vector<128x128xf32>
    %15 = tpu.matmul %13, %14, %cst {dimension_numbers = #tpu.dot_dimension_numbers<[1], [0], [0], [1], [0, 0, 1, 1], [], []>} : vector<128x1152xf32>, vector<1152x128xf32>, vector<128x128xf32> -> vector<128x128xf32>
    %cst_4 = arith.constant dense<0.000000e+00> : vector<128xf32>
    %16 = vector.multi_reduction <add>, %15, %cst_4 [0] : vector<128x128xf32> to vector<128xf32>
    %17 = vector.shape_cast %16 : vector<128xf32> to vector<1x128xf32>
    %18 = vector.shape_cast %17 : vector<1x128xf32> to vector<1x1x1x128xf32>
    %c0_5 = arith.constant 0 : index
    %c0_6 = arith.constant 0 : index
    %c0_7 = arith.constant 0 : index
    %c0_8 = arith.constant 0 : index
    %19 = vector.load %arg5[%c0_5, %c0_6, %c0_7, %c0_8] : memref<1x1x1x128xf32, #tpu.memory_space<vmem>>, vector<1x1x1x128xf32>
    tpu.vector_store %arg5[%c0_5, %c0_6, %c0_7, %c0_8], %18 {strides = array<i32>} : memref<1x1x1x128xf32, #tpu.memory_space<vmem>>, vector<1x1x1x128xf32>,
    %20 = arith.mulf %15, %15 : vector<128x128xf32>
    %cst_9 = arith.constant dense<0.000000e+00> : vector<128xf32>
    %21 = vector.multi_reduction <add>, %20, %cst_9 [0] : vector<128x128xf32> to vector<128xf32>
    %22 = vector.shape_cast %21 : vector<128xf32> to vector<1x128xf32>
    %23 = vector.shape_cast %22 : vector<1x128xf32> to vector<1x1x1x128xf32>
    %c0_10 = arith.constant 0 : index
    %c0_11 = arith.constant 0 : index
    %c0_12 = arith.constant 0 : index
    %c0_13 = arith.constant 0 : index
    %24 = vector.load %arg6[%c0_10, %c0_11, %c0_12, %c0_13] : memref<1x1x1x128xf32, #tpu.memory_space<vmem>>, vector<1x1x1x128xf32>
    tpu.vector_store %arg6[%c0_10, %c0_11, %c0_12, %c0_13], %23 {strides = array<i32>} : memref<1x1x1x128xf32, #tpu.memory_space<vmem>>, vector<1x1x1x128xf32>,
    %25 = vector.shape_cast %15 : vector<128x128xf32> to vector<1x1x128x128xf32>
    %c0_14 = arith.constant 0 : index
    %c0_15 = arith.constant 0 : index
    %c0_16 = arith.constant 0 : index
    %c0_17 = arith.constant 0 : index
    %26 = vector.load %arg4[%c0_14, %c0_15, %c0_16, %c0_17] : memref<1x1x128x128xf32, #tpu.memory_space<vmem>>, vector<1x1x128x128xf32>
    tpu.vector_store %arg4[%c0_14, %c0_15, %c0_16, %c0_17], %25 {strides = array<i32>} : memref<1x1x128x128xf32, #tpu.memory_space<vmem>>, vector<1x1x128x128xf32>,
    return
  }
  func.func @transform_1(%arg0: i32, %arg1: i32) -> (i32, i32) {
    %c0_i32 = arith.constant 0 : i32
    %c0_i32_0 = arith.constant 0 : i32
    %c0_i32_1 = arith.constant 0 : i32
    return %c0_i32, %c0_i32_0 : i32, i32
  }
  func.func @transform_2(%arg0: i32, %arg1: i32) -> (i32, i32, i32, i32) {
    %c0_i32 = arith.constant 0 : i32
    %c0_i32_0 = arith.constant 0 : i32
    %c0_i32_1 = arith.constant 0 : i32
    return %arg0, %arg1, %c0_i32, %c0_i32_0 : i32, i32, i32, i32
  }
  func.func @transform_3(%arg0: i32, %arg1: i32) -> (i32, i32, i32, i32) {
    %c0_i32 = arith.constant 0 : i32
    %c0_i32_0 = arith.constant 0 : i32
    %c0_i32_1 = arith.constant 0 : i32
    return %arg0, %arg1, %c0_i32, %c0_i32_0 : i32, i32, i32, i32
  }
  func.func @transform_4(%arg0: i32, %arg1: i32) -> (i32, i32, i32, i32) {
    %c0_i32 = arith.constant 0 : i32
    %c0_i32_0 = arith.constant 0 : i32
    %c0_i32_1 = arith.constant 0 : i32
    return %arg0, %arg1, %c0_i32, %c0_i32_0 : i32, i32, i32, i32
  }
}

module attributes {stable_mosaic.version = 11 : i64} {
  func.func @bn_relu_kernel(%arg0: i32, %arg1: i32, %arg2: memref<1x1x128x128xf32, #tpu.memory_space<vmem>>, %arg3: memref<1x128xf32, #tpu.memory_space<vmem>>, %arg4: memref<1x128xf32, #tpu.memory_space<vmem>>, %arg5: memref<1x1x128x128xf32, #tpu.memory_space<vmem>>) attributes {dimension_semantics = [#tpu.dimension_semantics<parallel>, #tpu.dimension_semantics<parallel>], iteration_bounds = array<i64: 2, 2>, scalar_prefetch = 0 : i64, scratch_operands = 0 : i64, tpu.core_type = #tpu.core_type<tc>, window_params = [{transform_indices = @transform_0, window_bounds = array<i64: 1, 1, 128, 128>}, {pipeline_mode = #tpu.pipeline_mode<synchronous>, transform_indices = @transform_1, window_bounds = array<i64: 1, 128>}, {pipeline_mode = #tpu.pipeline_mode<synchronous>, transform_indices = @transform_2, window_bounds = array<i64: 1, 128>}, {transform_indices = @transform_3, window_bounds = array<i64: 1, 1, 128, 128>}]} {
    %c0 = arith.constant 0 : index
    %c0_0 = arith.constant 0 : index
    %c0_1 = arith.constant 0 : index
    %c0_2 = arith.constant 0 : index
    %0 = vector.load %arg2[%c0, %c0_0, %c0_1, %c0_2] : memref<1x1x128x128xf32, #tpu.memory_space<vmem>>, vector<1x1x128x128xf32>
    %c0_3 = arith.constant 0 : index
    %c0_4 = arith.constant 0 : index
    %1 = vector.load %arg3[%c0_3, %c0_4] : memref<1x128xf32, #tpu.memory_space<vmem>>, vector<1x128xf32>
    %2 = vector.shape_cast %1 : vector<1x128xf32> to vector<1x1x1x128xf32>
    %3 = vector.broadcast %2 : vector<1x1x1x128xf32> to vector<1x1x128x128xf32>
    %4 = arith.mulf %0, %3 : vector<1x1x128x128xf32>
    %c0_5 = arith.constant 0 : index
    %c0_6 = arith.constant 0 : index
    %5 = vector.load %arg4[%c0_5, %c0_6] : memref<1x128xf32, #tpu.memory_space<vmem>>, vector<1x128xf32>
    %6 = vector.shape_cast %5 : vector<1x128xf32> to vector<1x1x1x128xf32>
    %7 = vector.broadcast %6 : vector<1x1x1x128xf32> to vector<1x1x128x128xf32>
    %8 = arith.addf %4, %7 : vector<1x1x128x128xf32>
    %cst = arith.constant 0.000000e+00 : f32
    %9 = vector.broadcast %cst : f32 to vector<1x1x128x128xf32>
    %10 = arith.maximumf %8, %9 : vector<1x1x128x128xf32>
    %c0_7 = arith.constant 0 : index
    %c0_8 = arith.constant 0 : index
    %c0_9 = arith.constant 0 : index
    %c0_10 = arith.constant 0 : index
    %11 = vector.load %arg5[%c0_7, %c0_8, %c0_9, %c0_10] : memref<1x1x128x128xf32, #tpu.memory_space<vmem>>, vector<1x1x128x128xf32>
    tpu.vector_store %arg5[%c0_7, %c0_8, %c0_9, %c0_10], %10 {strides = array<i32>} : memref<1x1x128x128xf32, #tpu.memory_space<vmem>>, vector<1x1x128x128xf32>,
    return
  }
  func.func @transform_0(%arg0: i32, %arg1: i32) -> (i32, i32, i32, i32) {
    %c0_i32 = arith.constant 0 : i32
    %c0_i32_0 = arith.constant 0 : i32
    %c0_i32_1 = arith.constant 0 : i32
    return %arg0, %arg1, %c0_i32, %c0_i32_0 : i32, i32, i32, i32
  }
  func.func @transform_1(%arg0: i32, %arg1: i32) -> (i32, i32) {
    %c0_i32 = arith.constant 0 : i32
    %c0_i32_0 = arith.constant 0 : i32
    %c0_i32_1 = arith.constant 0 : i32
    return %c0_i32, %c0_i32_0 : i32, i32
  }
  func.func @transform_2(%arg0: i32, %arg1: i32) -> (i32, i32) {
    %c0_i32 = arith.constant 0 : i32
    %c0_i32_0 = arith.constant 0 : i32
    %c0_i32_1 = arith.constant 0 : i32
    return %c0_i32, %c0_i32_0 : i32, i32
  }
  func.func @transform_3(%arg0: i32, %arg1: i32) -> (i32, i32, i32, i32) {
    %c0_i32 = arith.constant 0 : i32
    %c0_i32_0 = arith.constant 0 : i32
    %c0_i32_1 = arith.constant 0 : i32
    return %arg0, %arg1, %c0_i32, %c0_i32_0 : i32, i32, i32, i32
  }
}

</mosaic_0001>

<bundles_post_ra>
// kernel: conv_block_forward.3
= control target key start
LH: loop header
LB: loop body
LE: loop exit
PB: predicated region body
PF: predicated region fallthrough
CT: control target
= control target key end

     0   :  { %s511_s12 = smov 0   ;;  %s513_s13 = smov 0   ;;  %s611_s0 = inlined_call_operand.vmem [shape: f32[2,2,128,128], index: 0, kind: input, shape index: {}, may-alias: {0,3}]   ;;  %s612_s1 = inlined_call_operand.vmem [shape: f32[1,128], index: 1, kind: input, shape index: {}]   ;;  %s613_s2 = inlined_call_operand.vmem [shape: f32[1,128], index: 2, kind: input, shape index: {}]   ;;  %s614_s3 = inlined_call_operand.vmem [shape: f32[2,2,128,128], index: 3, kind: output, shape index: {}, may-alias: {0,3}]  }
   0x1   :  { %s515_s14 = smov 0   ;;  %s517_s15 = smov 0  }
   0x2   :  { %s519_s16 = smov 0  }
   0x3 LB: > { %s22_s17 = sadd.s32 1, %s481_s14  ;;  %s25_s18 = sadd.s32 1, %s485_s15  ;;  %s489_s16 = sphi %s519_s16, %s13_s16   ;;  %s485_s15 = sphi %s517_s15, %s618_s15   ;;  %s481_s14 = sphi %s515_s14, %s617_s14   ;;  %s477_s13 = sphi %s513_s13, %s616_s13   ;;  %s473_s12 = sphi %s511_s12, %s615_s12  }
   0x4   : > { %p23_p0 = scmp.ge.s32.totalorder %s22_s17, 2  ;;  %p400_p1 = scmp.ge.s32.totalorder %s489_s16, 1 }
   0x5   : > { %p157_p2 = scmp.lt.s32.totalorder %s489_s16, 5 }
   0x6   : > { %s620_s17 = smov (%p23_p0, %s22_s17), 0  ;;  %s622_s18 = smov (!%p23_p0, %s25_s18), %s485_s15 }
   0x7   : > { %p158_p3 = pnand %p400_p1, %p157_p2  ;;  %p27_p4 = scmp.ge.s32.totalorder %s622_s18, 2 }
   0x8   : > { %p189_p5 = scmp.lt.s32.totalorder (!%p158_p3), %s477_s13, 1  ;;  %p191_p6 = scmp.lt.s32.totalorder (!%p158_p3), %s473_s12, 1  ;;  %v407_v0 = vld [vmem:[%s612_s1] ss:$0 sm:$0xff] (!%p158_p3) }
   0x9   : > { %s624_s18 = smov (%p27_p4, %s622_s18), 0  ;;  %161 = sbr.rel (%p158_p3) target bundleno = 40 (0x28), region = 32 }
   0xa   : > { %v408_v1 = vld [vmem:[%s613_s2] ss:$0 sm:$0xff] (!%p158_p3) }
  0x10   : > { %s626_s13 = smov (!%p189_p5, %s477_s13), 1  ;;  %s628_s12 = smov (!%p191_p6, %s473_s12), 1 }
  0x11   : > { %s402_s19 = sshll.u32 %s626_s13, 5  ;;  %s401_s20 = sshll.u32 %s628_s12, 4 }
  0x12   : > { %s541_s21 = sadd.s32 %s402_s19, %s401_s20 }
  0x13   : > { %s403_s22 = sshll.u32 %s541_s21, 3 }
  0x14   : > { %s552_s27 = scalar_lea.vmem %s611_s0, %s403_s22  ;;  %s578_s5 = scalar_lea.vmem %s614_s3, %s403_s22 }
  0x15   : > { %v207_v2 = vld [vmem:[%s552_s27] sm:$0xff]  ;;  %v208_v3 = vld [vmem:[%s552_s27 + $0x8] sm:$0xff]  ;;  %v209_v4 = vld [vmem:[%s552_s27 + $0x10] sm:$0xff] }
  0x16   : > { %v210_v5 = vld [vmem:[%s552_s27 + $0x18] sm:$0xff]  ;;  %v211_v6 = vld [vmem:[%s552_s27 + $0x20] sm:$0xff]  ;;  %v212_v7 = vld [vmem:[%s552_s27 + $0x28] sm:$0xff]  ;;  %v230_v8 = vmul.f32 %v407_v0, %v207_v2  ;;  %v231_v9 = vmul.f32 %v407_v0, %v208_v3  ;;  %v232_v10 = vmul.f32 %v407_v0, %v209_v4 }
  0x17   : > { %v213_v11 = vld [vmem:[%s552_s27 + $0x30] sm:$0xff]  ;;  %v214_v12 = vld [vmem:[%s552_s27 + $0x38] sm:$0xff]  ;;  %v215_v13 = vld [vmem:[%s552_s27 + $0x40] sm:$0xff]  ;;  %v233_v14 = vmul.f32 %v407_v0, %v210_v5  ;;  %v234_v15 = vmul.f32 %v407_v0, %v211_v6  ;;  %v235_v16 = vmul.f32 %v407_v0, %v212_v7 }
  0x18   : > { %v216_v17 = vld [vmem:[%s552_s27 + $0x48] sm:$0xff]  ;;  %v217_v18 = vld [vmem:[%s552_s27 + $0x50] sm:$0xff]  ;;  %v218_v19 = vld [vmem:[%s552_s27 + $0x58] sm:$0xff]  ;;  %v236_v20 = vmul.f32 %v407_v0, %v213_v11  ;;  %v237_v21 = vmul.f32 %v407_v0, %v214_v12  ;;  %v238_v22 = vmul.f32 %v407_v0, %v215_v13  ;;  %v253_v23 = vadd.f32 %v408_v1, %v230_v8 }
  0x19   : > { %v219_v24 = vld [vmem:[%s552_s27 + $0x60] sm:$0xff]  ;;  %v220_v25 = vld [vmem:[%s552_s27 + $0x68] sm:$0xff]  ;;  %v221_v26 = vld [vmem:[%s552_s27 + $0x70] sm:$0xff]  ;;  %v239_v27 = vmul.f32 %v407_v0, %v216_v17  ;;  %v240_v28 = vmul.f32 %v407_v0, %v217_v18  ;;  %v241_v29 = vmul.f32 %v407_v0, %v218_v19  ;;  %v254_v30 = vadd.f32 %v408_v1, %v231_v9 }
  0x1a   : > { %v222_v31 = vld [vmem:[%s552_s27 + $0x78] sm:$0xff]  ;;  %v242_v32 = vmul.f32 %v407_v0, %v219_v24  ;;  %v243_v33 = vmul.f32 %v407_v0, %v220_v25  ;;  %v244_v34 = vmul.f32 %v407_v0, %v221_v26  ;;  %v255_v35 = vadd.f32 %v408_v1, %v232_v10 }
  0x1b   : > { %v245_v36 = vmul.f32 %v407_v0, %v222_v31  ;;  %v256_v37 = vadd.f32 %v408_v1, %v233_v14  ;;  %v257_v38 = vadd.f32 %v408_v1, %v234_v15  ;;  %v258_v39 = vadd.f32 %v408_v1, %v235_v16 }
  0x1c   : > { %v259_v40 = vadd.f32 %v408_v1, %v236_v20  ;;  %v260_v41 = vadd.f32 %v408_v1, %v237_v21  ;;  %v261_v42 = vadd.f32 %v408_v1, %v238_v22  ;;  %v262_v43 = vadd.f32 %v408_v1, %v239_v27 }
  0x1d   : > { %v263_v44 = vadd.f32 %v408_v1, %v240_v28  ;;  %v264_v45 = vadd.f32 %v408_v1, %v241_v29  ;;  %v265_v46 = vadd.f32 %v408_v1, %v242_v32  ;;  %v266_v47 = vadd.f32 %v408_v1, %v243_v33 }
  0x1e   : > { %v267_v48 = vadd.f32 %v408_v1, %v244_v34  ;;  %v268_v49 = vadd.f32 %v408_v1, %v245_v36  ;;  %v269_v50 = vmax.f32 %v253_v23, 0.0  ;;  %v270_v51 = vmax.f32 %v254_v30, 0.0 }
  0x1f   : > { %v271_v52 = vmax.f32 %v255_v35, 0.0  ;;  %v272_v53 = vmax.f32 %v256_v37, 0.0  ;;  %v273_v54 = vmax.f32 %v257_v38, 0.0  ;;  %v274_v55 = vmax.f32 %v258_v39, 0.0 }
  0x20   : > { %v275_v56 = vmax.f32 %v259_v40, 0.0  ;;  %v276_v57 = vmax.f32 %v260_v41, 0.0  ;;  %v277_v58 = vmax.f32 %v261_v42, 0.0  ;;  %v278_v59 = vmax.f32 %v262_v43, 0.0  ;;  %285 = vst [vmem:[%s578_s5] sm:$0xff] %v269_v50  ;;  %286 = vst [vmem:[%s578_s5 + $0x8] sm:$0xff] %v270_v51 }
  0x21   : > { %v279_v60 = vmax.f32 %v263_v44, 0.0  ;;  %v280_v61 = vmax.f32 %v264_v45, 0.0  ;;  %v281_v62 = vmax.f32 %v265_v46, 0.0  ;;  %v282_v63 = vmax.f32 %v266_v47, 0.0  ;;  %287 = vst [vmem:[%s578_s5 + $0x10] sm:$0xff] %v271_v52  ;;  %288 = vst [vmem:[%s578_s5 + $0x18] sm:$0xff] %v272_v53 }
  0x22   : > { %289 = vst [vmem:[%s578_s5 + $0x20] sm:$0xff] %v273_v54  ;;  %290 = vst [vmem:[%s578_s5 + $0x28] sm:$0xff] %v274_v55  ;;  %v283_v0 = vmax.f32 %v267_v48, 0.0  ;;  %v284_v1 = vmax.f32 %v268_v49, 0.0 }
  0x23   : > { %291 = vst [vmem:[%s578_s5 + $0x30] sm:$0xff] %v275_v56  ;;  %292 = vst [vmem:[%s578_s5 + $0x38] sm:$0xff] %v276_v57 }
  0x24   : > { %293 = vst [vmem:[%s578_s5 + $0x40] sm:$0xff] %v277_v58  ;;  %294 = vst [vmem:[%s578_s5 + $0x48] sm:$0xff] %v278_v59 }
  0x25   : > { %295 = vst [vmem:[%s578_s5 + $0x50] sm:$0xff] %v279_v60  ;;  %296 = vst [vmem:[%s578_s5 + $0x58] sm:$0xff] %v280_v61 }
  0x26   : > { %297 = vst [vmem:[%s578_s5 + $0x60] sm:$0xff] %v281_v62  ;;  %298 = vst [vmem:[%s578_s5 + $0x68] sm:$0xff] %v282_v63 }
  0x27   : > { %299 = vst [vmem:[%s578_s5 + $0x70] sm:$0xff] %v283_v0  ;;  %300 = vst [vmem:[%s578_s5 + $0x78] sm:$0xff] %v284_v1 }
  0x28 PF: > { %s13_s16 = sadd.s32 1, %s489_s16   ;;  %s615_s12 = smov %s481_s14 }
  0x29   : > { %p10_p7 = scmp.ge.s32.totalorder %s13_s16, 6   ;;  %s616_s13 = smov %s485_s15 }
  0x2a   : > { %s617_s14 = smov %s620_s17  ;;  %s618_s15 = smov %s624_s18 }
  0x2b   :  { %12 = sbr.rel (!%p10_p7) target bundleno = 3 (0x3), region = 62 }

// kernel: conv_block_forward.2
= control target key start
LH: loop header
LB: loop body
LE: loop exit
PB: predicated region body
PF: predicated region fallthrough
CT: control target
= control target key end

     0   :  { %s2383_s15 = smov 0   ;;  %s2385_s16 = smov 0   ;;  %s3339_s0 = inlined_call_operand.vmem [shape: f32[2,18,18,128], index: 0, kind: input, shape index: {}]   ;;  %s3340_s1 = inlined_call_operand.vmem [shape: f32[1152,128], index: 1, kind: input, shape index: {}]   ;;  %s3341_s2 = inlined_call_operand.vmem [shape: f32[2,2,128,128], index: 2, kind: output, shape index: {0}]   ;;  %s3342_s3 = inlined_call_operand.vmem [shape: f32[2,2,1,128], index: 3, kind: output, shape index: {1}]   ;;  %s3343_s4 = inlined_call_operand.vmem [shape: f32[2,2,1,128], index: 4, kind: output, shape index: {2}]  }
   0x1   :  { %s2387_s17 = smov 0   ;;  %s2389_s18 = smov 0  }
   0x2   :  { %s2391_s19 = smov 0  }
   0x3 LB: > { %s24_s20 = sadd.s32 1, %s2348_s17  ;;  %s27_s21 = sadd.s32 1, %s2352_s18  ;;  %s2356_s19 = sphi %s2391_s19, %s15_s19   ;;  %s2352_s18 = sphi %s2389_s18, %s3347_s18   ;;  %s2348_s17 = sphi %s2387_s17, %s3346_s17   ;;  %s2344_s16 = sphi %s2385_s16, %s3345_s16   ;;  %s2340_s15 = sphi %s2383_s15, %s3344_s15  }
   0x4   : > { %p25_p0 = scmp.ge.s32.totalorder %s24_s20, 2  ;;  %p1672_p1 = scmp.ge.s32.totalorder %s2356_s19, 1 }
   0x5   : > { %p151_p2 = scmp.lt.s32.totalorder %s2356_s19, 5 }
   0x6   : > { %s3349_s20 = smov (%p25_p0, %s24_s20), 0  ;;  %s3351_s21 = smov (!%p25_p0, %s27_s21), %s2352_s18 }
   0x7   : > { %p152_p3 = pnand %p1672_p1, %p151_p2  ;;  %p29_p4 = scmp.ge.s32.totalorder %s3351_s21, 2 }
   0x8   : > { %p188_p5 = scmp.lt.s32.totalorder (!%p152_p3), %s2344_s16, 1  ;;  %p190_p6 = scmp.lt.s32.totalorder (!%p152_p3), %s2340_s15, 1 }
   0x9   : > { %s3353_s21 = smov (%p29_p4, %s3351_s21), 0  ;;  %155 = sbr.rel (%p152_p3) target bundleno = 473 (0x1d9), region = 24 }
  0x10   : > { %s189_s22 = scalar_select %p188_p5, %s2344_s16, 1 }
  0x11   : > { %s191_s23 = scalar_select %p190_p6, %s2340_s15, 1 }
  0x12   : > { %s1674_s24 = sshll.u32 %s189_s22, 5  ;;  %s1676_s25 = sshll.u32 %s189_s22, 1 }
  0x13   : > { %s1673_s26 = sshll.u32 %s191_s23, 4  ;;  %s2421_s27 = sadd.s32 %s1676_s25, %s191_s23 }
  0x14   : > { %s194_s28 = sadd.s32 %s1674_s24, %s1673_s26  ;;  %s203_s5 = scalar_lea.vmem %s3342_s3, %s2421_s27 }
  0x15   : > { %s1675_s6 = sshll.u32 %s194_s28, 3  ;;  %s210_s9 = scalar_lea.vmem %s3343_s4, %s2421_s27 }
  0x16   : > { %s2434_s12 = scalar_lea.vmem %s3341_s2, %s1675_s6 }
  0x17   : > { %s1679_s13 = smul.u32 192, %s2340_s15 }
  0x18   : > { %s213_s14 = smul.u32 432, %s2344_s16 }
  0x1a   : > { %s214_s22 = sadd.s32 %s1679_s13, %s213_s14 }
  0x1b   : > { %s2441_s25 = scalar_lea.vmem %s3339_s0, %s214_s22 }
  0x1c   : > { %v271_v0 = vld [vmem:[%s2441_s25] sm:$0xff]  ;;  %v273_v1 = vld [vmem:[%s2441_s25 + $0x8] sm:$0xff]  ;;  %v275_v2 = vld [vmem:[%s2441_s25 + $0x18] sm:$0xff] }
  0x1d   : > { %272 = vst [vmem:[#allocation2] sm:$0xff] %v271_v0  ;;  %274 = vst [vmem:[#allocation2 + $0x8] sm:$0xff] %v273_v1  ;;  %v277_v3 = vld [vmem:[%s2441_s25 + $0x20] sm:$0xff]  ;;  %v279_v4 = vld [vmem:[%s2441_s25 + $0x30] sm:$0xff] }
  0x1e   : > { %276 = vst [vmem:[#allocation2 + $0x18] sm:$0xff] %v275_v2  ;;  %v281_v5 = vld [vmem:[%s2441_s25 + $0x38] sm:$0xff]  ;;  %278 = vst [vmem:[#allocation2 + $0x20] sm:$0xff] %v277_v3  ;;  %v283_v6 = vld [vmem:[%s2441_s25 + $0x48] sm:$0xff] }
  0x1f   : > { %280 = vst [vmem:[#allocation2 + $0x30] sm:$0xff] %v279_v4  ;;  %282 = vst [vmem:[#allocation2 + $0x38] sm:$0xff] %v281_v5  ;;  %v285_v7 = vld [vmem:[%s2441_s25 + $0x50] sm:$0xff]  ;;  %v287_v8 = vld [vmem:[%s2441_s25 + $0x60] sm:$0xff] }
  0x20   : > { %284 = vst [vmem:[#allocation2 + $0x48] sm:$0xff] %v283_v6  ;;  %286 = vst [vmem:[#allocation2 + $0x50] sm:$0xff] %v285_v7  ;;  %v289_v9 = vld [vmem:[%s2441_s25 + $0x68] sm:$0xff]  ;;  %v291_v10 = vld [vmem:[%s2441_s25 + $0x78] sm:$0xff] }
  0x21   : > { %288 = vst [vmem:[#allocation2 + $0x60] sm:$0xff] %v287_v8  ;;  %v293_v11 = vld [vmem:[%s2441_s25 + $0x80] sm:$0xff]  ;;  %290 = vst [vmem:[#allocation2 + $0x68] sm:$0xff] %v289_v9  ;;  %v295_v12 = vld [vmem:[%s2441_s25 + $0x90] sm:$0xff] }
  0x22   : > { %292 = vst [vmem:[#allocation2 + $0x78] sm:$0xff] %v291_v10  ;;  %294 = vst [vmem:[#allocation2 + $0x80] sm:$0xff] %v293_v11  ;;  %v297_v13 = vld [vmem:[%s2441_s25 + $0x98] sm:$0xff]  ;;  %v299_v14 = vld [vmem:[%s2441_s25 + $0xa8] sm:$0xff] }
  0x23   : > { %296 = vst [vmem:[#allocation2 + $0x90] sm:$0xff] %v295_v12  ;;  %298 = vst [vmem:[#allocation2 + $0x98] sm:$0xff] %v297_v13  ;;  %v301_v15 = vld [vmem:[%s2441_s25 + $0xb0] sm:$0xff]  ;;  %v303_v16 = vld [vmem:[%s2441_s25 + $0xc0] sm:$0xff] }
  0x24   : > { %300 = vst [vmem:[#allocation2 + $0xa8] sm:$0xff] %v299_v14  ;;  %v305_v17 = vld [vmem:[%s2441_s25 + $0xc8] sm:$0xff]  ;;  %302 = vst [vmem:[#allocation2 + $0xb0] sm:$0xff] %v301_v15  ;;  %v307_v18 = vld [vmem:[%s2441_s25 + $0xd8] sm:$0xff] }
  0x25   : > { %304 = vst [vmem:[#allocation2 + $0xc0] sm:$0xff] %v303_v16  ;;  %306 = vst [vmem:[#allocation2 + $0xc8] sm:$0xff] %v305_v17  ;;  %v309_v19 = vld [vmem:[%s2441_s25 + $0xe0] sm:$0xff]  ;;  %v1680_v20 = vld [vmem:[%s2441_s25 + $0x10] sm:$0x3] }
  0x26   : > { %308 = vst [vmem:[#allocation2 + $0xd8] sm:$0xff] %v307_v18  ;;  %310 = vst [vmem:[#allocation2 + $0xe0] sm:$0xff] %v309_v19  ;;  %v1681_v21 = vld [vmem:[%s2441_s25 + $0x28] sm:$0x3]  ;;  %v1682_v22 = vld [vmem:[%s2441_s25 + $0x40] sm:$0x3] }
  0x27   : > { %321 = vst [vmem:[#allocation2 + $0x10] sm:$0x3] %v1680_v20  ;;  %v1683_v23 = vld [vmem:[%s2441_s25 + $0x58] sm:$0x3]  ;;  %323 = vst [vmem:[#allocation2 + $0x28] sm:$0x3] %v1681_v21 }
  0x28   : > { %325 = vst [vmem:[#allocation2 + $0x40] sm:$0x3] %v1682_v22  ;;  %327 = vst [vmem:[#allocation2 + $0x58] sm:$0x3] %v1683_v23  ;;  %v1684_v24 = vld [vmem:[%s2441_s25 + $0x70] sm:$0x3] }
  0x29   : > { %v1685_v25 = vld [vmem:[%s2441_s25 + $0x88] sm:$0x3]  ;;  %v1686_v26 = vld [vmem:[%s2441_s25 + $0xa0] sm:$0x3]  ;;  %329 = vst [vmem:[#allocation2 + $0x70] sm:$0x3] %v1684_v24 }
  0x2a   : > { %331 = vst [vmem:[#allocation2 + $0x88] sm:$0x3] %v1685_v25  ;;  %333 = vst [vmem:[#allocation2 + $0xa0] sm:$0x3] %v1686_v26  ;;  %v1687_v27 = vld [vmem:[%s2441_s25 + $0xb8] sm:$0x3] }
  0x2b   : > { %v1688_v28 = vld [vmem:[%s2441_s25 + $0xd0] sm:$0x3]  ;;  %v1689_v29 = vld [vmem:[%s2441_s25 + $0xe8] sm:$0x3]  ;;  %335 = vst [vmem:[#allocation2 + $0xb8] sm:$0x3] %v1687_v27 }
  0x2c   : > { %337 = vst [vmem:[#allocation2 + $0xd0] sm:$0x3] %v1688_v28  ;;  %339 = vst [vmem:[#allocation2 + $0xe8] sm:$0x3] %v1689_v29 }
  0x2d   : > { %343 = vsyncadd [#allocation3], 2880 }
  0x2e   : > { %2336 = dma.done.wait [#allocation3], 2880 }
  0x2f   : > { %2337 = vsyncadd [#allocation3], 4294964416  ;;  %v566_v30 = vld [vmem:[%s3340_s1 + $0x80] sm:$0xff]  ;;  %v567_v31 = vld [vmem:[%s3340_s1 + $0x88] sm:$0xff]  ;;  %vm402_vm0 = vcmask 1046528   ;;  %vm459_vm1 = vcmask 1045504  }
  0x30   : > { %v598_v32 = vld [vmem:[%s3340_s1 + $0x180] sm:$0xff]  ;;  %v2100_v33 = vpack.c.bf16 %v567_v31, %v566_v30  ;;  %v599_v34 = vld [vmem:[%s3340_s1 + $0x188] sm:$0xff]  ;;  %v568_v41 = vld [vmem:[%s3340_s1 + $0x90] sm:$0xff] }
  0x31   : > { %v550_v35 = vld [vmem:[%s3340_s1] sm:$0xff]  ;;  %v551_v36 = vld [vmem:[%s3340_s1 + $0x8] sm:$0xff]  ;;  %v2132_v37 = vpack.c.bf16 %v599_v34, %v598_v32  ;;  %v569_v43 = vld [vmem:[%s3340_s1 + $0x98] sm:$0xff] }
  0x32   : > { %v2102_v38 = vpack.c.bf16 %v551_v36, %v550_v35  ;;  %v582_v39 = vld [vmem:[%s3340_s1 + $0x100] sm:$0xff]  ;;  %v583_v40 = vld [vmem:[%s3340_s1 + $0x108] sm:$0xff]  ;;  %2101 = vmatprep.subr.bf16.mxu0 %v2100_v33  ;;  %v600_v44 = vld [vmem:[%s3340_s1 + $0x190] sm:$0xff]  ;;  %v2104_v46 = vpack.c.bf16 %v569_v43, %v568_v41 }
  0x33   : > { %v2134_v42 = vpack.c.bf16 %v583_v40, %v582_v39  ;;  %v601_v45 = vld [vmem:[%s3340_s1 + $0x198] sm:$0xff]  ;;  %2133 = vmatprep.subr.bf16.mxu1 %v2132_v37  ;;  %v552_v48 = vld [vmem:[%s3340_s1 + $0x10] sm:$0xff]  ;;  %v570_v53 = vld [vmem:[%s3340_s1 + $0xa0] sm:$0xff] }
  0x34   : > { %2103 = vmatpush3.bf16.msra.mxu0 %v2102_v38  ;;  %v2136_v47 = vpack.c.bf16 %v601_v45, %v600_v44  ;;  %v553_v49 = vld [vmem:[%s3340_s1 + $0x18] sm:$0xff]  ;;  %v584_v50 = vld [vmem:[%s3340_s1 + $0x110] sm:$0xff]  ;;  %v571_v54 = vld [vmem:[%s3340_s1 + $0xa8] sm:$0xff] }
  0x35   : > { %2135 = vmatpush3.bf16.msra.mxu1 %v2134_v42  ;;  %v2106_v51 = vpack.c.bf16 %v553_v49, %v552_v48  ;;  %v585_v52 = vld [vmem:[%s3340_s1 + $0x118] sm:$0xff]  ;;  %2105 = vmatprep.subr.bf16.mxu0 %v2104_v46  ;;  %v2108_v56 = vpack.c.bf16 %v571_v54, %v570_v53  ;;  %v602_v57 = vld [vmem:[%s3340_s1 + $0x1a0] sm:$0xff]  ;;  %v603_v58 = vld [vmem:[%s3340_s1 + $0x1a8] sm:$0xff] }
  0x36   : > { %2137 = vmatprep.subr.bf16.mxu1 %v2136_v47  ;;  %v2138_v55 = vpack.c.bf16 %v585_v52, %v584_v50  ;;  %v554_v59 = vld [vmem:[%s3340_s1 + $0x20] sm:$0xff]  ;;  %v2140_v60 = vpack.c.bf16 %v603_v58, %v602_v57  ;;  %v555_v61 = vld [vmem:[%s3340_s1 + $0x28] sm:$0xff]  ;;  %v572_v1 = vld [vmem:[%s3340_s1 + $0xb0] sm:$0xff] }
  0x37   : > { %v586_v62 = vld [vmem:[%s3340_s1 + $0x120] sm:$0xff]  ;;  %v587_v63 = vld [vmem:[%s3340_s1 + $0x128] sm:$0xff]  ;;  %v2110_v0 = vpack.c.bf16 %v555_v61, %v554_v59  ;;  %v573_v2 = vld [vmem:[%s3340_s1 + $0xb8] sm:$0xff] }
  0x38   : > { %2107 = vmatpush3.bf16.msra.mxu0 %v2106_v51  ;;  %v604_v3 = vld [vmem:[%s3340_s1 + $0x1b0] sm:$0xff]  ;;  %v2142_v4 = vpack.c.bf16 %v587_v63, %v586_v62  ;;  %v2112_v5 = vpack.c.bf16 %v573_v2, %v572_v1  ;;  %v605_v6 = vld [vmem:[%s3340_s1 + $0x1b8] sm:$0xff]  ;;  %v574_v12 = vld [vmem:[%s3340_s1 + $0xc0] sm:$0xff] }
  0x39   : > { %2139 = vmatpush3.bf16.msra.mxu1 %v2138_v55  ;;  %2109 = vmatprep.subr.bf16.mxu0 %v2108_v56  ;;  %v556_v7 = vld [vmem:[%s3340_s1 + $0x30] sm:$0xff]  ;;  %v557_v8 = vld [vmem:[%s3340_s1 + $0x38] sm:$0xff]  ;;  %v2144_v9 = vpack.c.bf16 %v605_v6, %v604_v3  ;;  %v575_v13 = vld [vmem:[%s3340_s1 + $0xc8] sm:$0xff] }
  0x3a   : > { %2141 = vmatprep.subr.bf16.mxu1 %v2140_v60  ;;  %v588_v10 = vld [vmem:[%s3340_s1 + $0x130] sm:$0xff]  ;;  %v589_v11 = vld [vmem:[%s3340_s1 + $0x138] sm:$0xff]  ;;  %v606_v14 = vld [vmem:[%s3340_s1 + $0x1c0] sm:$0xff]  ;;  %v2114_v16 = vpack.c.bf16 %v557_v8, %v556_v7  ;;  %v2116_v18 = vpack.c.bf16 %v575_v13, %v574_v12 }
  0x3b   : > { %v607_v15 = vld [vmem:[%s3340_s1 + $0x1c8] sm:$0xff]  ;;  %v2146_v17 = vpack.c.bf16 %v589_v11, %v588_v10  ;;  %v558_v19 = vld [vmem:[%s3340_s1 + $0x40] sm:$0xff]  ;;  %v576_v24 = vld [vmem:[%s3340_s1 + $0xd0] sm:$0xff] }
  0x3c   : > { %2111 = vmatpush3.bf16.msra.mxu0 %v2110_v0  ;;  %v559_v20 = vld [vmem:[%s3340_s1 + $0x48] sm:$0xff]  ;;  %v590_v21 = vld [vmem:[%s3340_s1 + $0x140] sm:$0xff]  ;;  %v2148_v22 = vpack.c.bf16 %v607_v15, %v606_v14  ;;  %v577_v25 = vld [vmem:[%s3340_s1 + $0xd8] sm:$0xff] }
  0x3d   : > { %2143 = vmatpush3.bf16.msra.mxu1 %v2142_v4  ;;  %2113 = vmatprep.subr.bf16.mxu0 %v2112_v5  ;;  %v591_v23 = vld [vmem:[%s3340_s1 + $0x148] sm:$0xff]  ;;  %v608_v26 = vld [vmem:[%s3340_s1 + $0x1d0] sm:$0xff]  ;;  %v609_v27 = vld [vmem:[%s3340_s1 + $0x1d8] sm:$0xff]  ;;  %v2118_v28 = vpack.c.bf16 %v559_v20, %v558_v19  ;;  %v2120_v30 = vpack.c.bf16 %v577_v25, %v576_v24 }
  0x3e   : > { %2145 = vmatprep.subr.bf16.mxu1 %v2144_v9  ;;  %v2150_v29 = vpack.c.bf16 %v591_v23, %v590_v21  ;;  %v560_v31 = vld [vmem:[%s3340_s1 + $0x50] sm:$0xff]  ;;  %v561_v32 = vld [vmem:[%s3340_s1 + $0x58] sm:$0xff]  ;;  %v2152_v34 = vpack.c.bf16 %v609_v27, %v608_v26  ;;  %v578_v36 = vld [vmem:[%s3340_s1 + $0xe0] sm:$0xff] }
  0x3f   : > { %v592_v33 = vld [vmem:[%s3340_s1 + $0x150] sm:$0xff]  ;;  %v593_v35 = vld [vmem:[%s3340_s1 + $0x158] sm:$0xff]  ;;  %v579_v37 = vld [vmem:[%s3340_s1 + $0xe8] sm:$0xff]  ;;  %v2122_v40 = vpack.c.bf16 %v561_v32, %v560_v31 }
  0x40   : > { %2115 = vmatpush3.bf16.msra.mxu0 %v2114_v16  ;;  %v610_v38 = vld [vmem:[%s3340_s1 + $0x1e0] sm:$0xff]  ;;  %v611_v39 = vld [vmem:[%s3340_s1 + $0x1e8] sm:$0xff]  ;;  %v2154_v44 = vpack.c.bf16 %v593_v35, %v592_v33  ;;  %v2124_v45 = vpack.c.bf16 %v579_v37, %v578_v36  ;;  %v580_v50 = vld [vmem:[%s3340_s1 + $0xf0] sm:$0xff] }
  0x41   : > { %2147 = vmatpush3.bf16.msra.mxu1 %v2146_v17  ;;  %2117 = vmatprep.subr.bf16.mxu0 %v2116_v18  ;;  %v562_v41 = vld [vmem:[%s3340_s1 + $0x60] sm:$0xff]  ;;  %v563_v42 = vld [vmem:[%s3340_s1 + $0x68] sm:$0xff]  ;;  %v2156_v49 = vpack.c.bf16 %v611_v39, %v610_v38  ;;  %v581_v51 = vld [vmem:[%s3340_s1 + $0xf8] sm:$0xff] }
  0x42   : > { %2149 = vmatprep.subr.bf16.mxu1 %v2148_v22  ;;  %v594_v43 = vld [vmem:[%s3340_s1 + $0x160] sm:$0xff]  ;;  %v595_v46 = vld [vmem:[%s3340_s1 + $0x168] sm:$0xff]  ;;  %v2653_v54 = vld [vmem:[#allocation2 + $0x18] sm:$0xff]  ;;  %v2126_v57 = vpack.c.bf16 %v563_v42, %v562_v41  ;;  %v2128_v60 = vpack.c.bf16 %v581_v51, %v580_v50 }
  0x43   : > { %v2641_v47 = vld [vmem:[#allocation2] sm:$0xff]  ;;  %v2643_v48 = vld [vmem:[#allocation2 + $0x8] sm:$0xff]  ;;  %v612_v55 = vld [vmem:[%s3340_s1 + $0x1f0] sm:$0xff]  ;;  %903 = vmatprep.mubr.f32.mxu1 %v2653_v54  ;;  %v2158_v59 = vpack.c.bf16 %v595_v46, %v594_v43  ;;  %v408_v26 = vrot.slane %v2653_v54, 1  ;;  %v465_v39 = vrot.slane %v2653_v54, 2 }
  0x44   : > { %2119 = vmatpush3.bf16.msra.mxu0 %v2118_v28  ;;  %v403_v52 = vrot.slane %v2641_v47, 1  ;;  %v404_v53 = vrot.slane %v2643_v48, 1  ;;  %v613_v56 = vld [vmem:[%s3340_s1 + $0x1f8] sm:$0xff]  ;;  %v564_v61 = vld [vmem:[%s3340_s1 + $0x70] sm:$0xff]  ;;  %v630_v2 = vld [vmem:[%s3340_s1 + $0x280] sm:$0xff]  ;;  %v460_v9 = vrot.slane %v2641_v47, 2 }
  0x45   : > { %2151 = vmatpush3.bf16.msra.mxu1 %v2150_v29  ;;  %2121 = vmatprep.subr.bf16.mxu0 %v2120_v30  ;;  %v565_v62 = vld [vmem:[%s3340_s1 + $0x78] sm:$0xff]  ;;  %v596_v63 = vld [vmem:[%s3340_s1 + $0x170] sm:$0xff]  ;;  %v2160_v0 = vpack.c.bf16 %v613_v56, %v612_v55  ;;  %v631_v3 = vld [vmem:[%s3340_s1 + $0x288] sm:$0xff]  ;;  %v461_v10 = vrot.slane %v2643_v48, 2 }
  0x46   : > { %2153 = vmatprep.subr.bf16.mxu1 %v2152_v34  ;;  %v405_v58 = vsel %vm402_vm0, %v403_v52, %v404_v53  ;;  %v597_v1 = vld [vmem:[%s3340_s1 + $0x178] sm:$0xff]  ;;  %v350_v4 = vld [vmem:[#allocation2 + $0x10] sm:$0x3]  ;;  %v662_v5 = vld [vmem:[%s3340_s1 + $0x380] sm:$0xff]  ;;  %v2130_v6 = vpack.c.bf16 %v565_v62, %v564_v61  ;;  %v2164_v11 = vpack.c.bf16 %v631_v3, %v630_v2 }
  0x47   : > { %758 = vmatprep.mubr.f32.mxu0 %v405_v58  ;;  %v663_v7 = vld [vmem:[%s3340_s1 + $0x388] sm:$0xff]  ;;  %v2162_v8 = vpack.c.bf16 %v597_v1, %v596_v63  ;;  %v614_v12 = vld [vmem:[%s3340_s1 + $0x200] sm:$0xff]  ;;  %v406_v14 = vrot.slane %v350_v4, 1  ;;  %v632_v16 = vld [vmem:[%s3340_s1 + $0x290] sm:$0xff]  ;;  %v462_v24 = vsel %vm459_vm1, %v460_v9, %v461_v10  ;;  %v463_v25 = vrot.slane %v350_v4, 2 }
  0x48   : > { %2123 = vmatpush3.bf16.msra.mxu0 %v2122_v40  ;;  %v615_v13 = vld [vmem:[%s3340_s1 + $0x208] sm:$0xff]  ;;  %v2695_v15 = vld [vmem:[#allocation2 + $0x20] sm:$0xff]  ;;  %v2196_v17 = vpack.c.bf16 %v663_v7, %v662_v5  ;;  %v633_v18 = vld [vmem:[%s3340_s1 + $0x298] sm:$0xff] }
  0x49   : > { %2155 = vmatpush3.bf16.msra.mxu1 %v2154_v44  ;;  %2125 = vmatprep.subr.bf16.mxu0 %v2124_v45  ;;  %v646_v19 = vld [vmem:[%s3340_s1 + $0x300] sm:$0xff]  ;;  %v647_v20 = vld [vmem:[%s3340_s1 + $0x308] sm:$0xff]  ;;  %v2166_v21 = vpack.c.bf16 %v615_v13, %v614_v12  ;;  %v664_v22 = vld [vmem:[%s3340_s1 + $0x390] sm:$0xff]  ;;  %v409_v27 = vrot.slane %v2695_v15, 1  ;;  %v407_v29 = vsel %vm402_vm0, %v404_v53, %v406_v14  ;;  %v2168_v30 = vpack.c.bf16 %v633_v18, %v632_v16 }
  0x4a   : > { %2157 = vmatprep.subr.bf16.mxu1 %v2156_v49  ;;  %v665_v23 = vld [vmem:[%s3340_s1 + $0x398] sm:$0xff]  ;;  %v616_v28 = vld [vmem:[%s3340_s1 + $0x210] sm:$0xff]  ;;  %v2725_v32 = vld [vmem:[#allocation2 + $0x28] sm:$0x3]  ;;  %v2198_v34 = vpack.c.bf16 %v647_v20, %v646_v19  ;;  %v466_v40 = vrot.slane %v2695_v15, 2  ;;  %v464_v43 = vsel %vm459_vm1, %v461_v10, %v463_v25 }
  0x4b   : > { %v617_v31 = vld [vmem:[%s3340_s1 + $0x218] sm:$0xff]  ;;  %v634_v33 = vld [vmem:[%s3340_s1 + $0x2a0] sm:$0xff]  ;;  %v635_v35 = vld [vmem:[%s3340_s1 + $0x2a8] sm:$0xff]  ;;  %v2200_v36 = vpack.c.bf16 %v665_v23, %v664_v22  ;;  %v2751_v44 = vsel %vm402_vm0, %v408_v26, %v409_v27 }
  0x4c   : > { %2127 = vmatpush3.bf16.msra.mxu0 %v2126_v57  ;;  %v648_v37 = vld [vmem:[%s3340_s1 + $0x310] sm:$0xff]  ;;  %v649_v38 = vld [vmem:[%s3340_s1 + $0x318] sm:$0xff]  ;;  %v666_v41 = vld [vmem:[%s3340_s1 + $0x3a0] sm:$0xff]  ;;  %v2170_v46 = vpack.c.bf16 %v617_v31, %v616_v28  ;;  %v2172_v50 = vpack.c.bf16 %v635_v35, %v634_v33 }
  0x4d   : > { %2159 = vmatpush3.bf16.msra.mxu1 %v2158_v59  ;;  %2129 = vmatprep.subr.bf16.mxu0 %v2128_v60  ;;  %v667_v42 = vld [vmem:[%s3340_s1 + $0x3a8] sm:$0xff]  ;;  %v2753_v45 = vld [vmem:[#allocation2 + $0x30] sm:$0xff]  ;;  %v2756_v49 = vld [vmem:[#allocation2 + $0x38] sm:$0xff]  ;;  %v2202_v55 = vpack.c.bf16 %v649_v38, %v648_v37  ;;  %v2779_v60 = vsel %vm459_vm1, %v465_v39, %v466_v40 }
  0x4e   : > { %2161 = vmatprep.subr.bf16.mxu1 %v2160_v0  ;;  %v618_v51 = vld [vmem:[%s3340_s1 + $0x220] sm:$0xff]  ;;  %v619_v52 = vld [vmem:[%s3340_s1 + $0x228] sm:$0xff]  ;;  %v636_v53 = vld [vmem:[%s3340_s1 + $0x2b0] sm:$0xff]  ;;  %v2204_v57 = vpack.c.bf16 %v667_v42, %v666_v41  ;;  %v468_v0 = vrot.slane %v2725_v32, 2  ;;  %v414_v1 = vrot.slane %v2756_v49, 1  ;;  %v471_v13 = vrot.slane %v2756_v49, 2 }
  0x4f   : > { %v637_v56 = vld [vmem:[%s3340_s1 + $0x2b8] sm:$0xff]  ;;  %v650_v58 = vld [vmem:[%s3340_s1 + $0x320] sm:$0xff]  ;;  %v651_v59 = vld [vmem:[%s3340_s1 + $0x328] sm:$0xff]  ;;  %v2174_v2 = vpack.c.bf16 %v619_v52, %v618_v51 }
  0x50   : > { %2131 = vmatpush3.bf16.msra.mxu0 %v2130_v6  ;;  %v668_v61 = vld [vmem:[%s3340_s1 + $0x3b0] sm:$0xff]  ;;  %v669_v62 = vld [vmem:[%s3340_s1 + $0x3b8] sm:$0xff]  ;;  %v2794_v3 = vld [vmem:[#allocation2 + $0x40] sm:$0x3]  ;;  %v2176_v4 = vpack.c.bf16 %v637_v56, %v636_v53 }
  0x51   : > { %2163 = vmatpush3.bf16.msra.mxu1 %v2162_v8  ;;  %2165 = vmatprep.subr.bf16.mxu0 %v2164_v11  ;;  %v620_v5 = vld [vmem:[%s3340_s1 + $0x230] sm:$0xff]  ;;  %v621_v6 = vld [vmem:[%s3340_s1 + $0x238] sm:$0xff]  ;;  %v638_v7 = vld [vmem:[%s3340_s1 + $0x2c0] sm:$0xff]  ;;  %v2206_v8 = vpack.c.bf16 %v651_v59, %v650_v58  ;;  %v2208_v10 = vpack.c.bf16 %v669_v62, %v668_v61  ;;  %v416_v20 = vrot.slane %v2794_v3, 1 }
  0x52   : > { %2197 = vmatprep.subr.bf16.mxu1 %v2196_v17  ;;  %v639_v9 = vld [vmem:[%s3340_s1 + $0x2c8] sm:$0xff]  ;;  %v652_v11 = vld [vmem:[%s3340_s1 + $0x330] sm:$0xff]  ;;  %v653_v12 = vld [vmem:[%s3340_s1 + $0x338] sm:$0xff]  ;;  %v2827_v17 = vsel %vm459_vm1, %v466_v40, %v468_v0  ;;  %v2178_v22 = vpack.c.bf16 %v621_v6, %v620_v5 }
  0x53   : > { %759 = vmatmul.mubr.f32.vlgmr.msra.gmra.mrb[0].mxu0 %v2641_v47  ;;  %v411_v47 = vrot.slane %v2725_v32, 1  ;;  %v670_v14 = vld [vmem:[%s3340_s1 + $0x3c0] sm:$0xff]  ;;  %v671_v16 = vld [vmem:[%s3340_s1 + $0x3c8] sm:$0xff]  ;;  %v2180_v23 = vpack.c.bf16 %v639_v9, %v638_v7  ;;  %v640_v26 = vld [vmem:[%s3340_s1 + $0x2d0] sm:$0xff]  ;;  %v2870_v35 = vsel %vm402_vm0, %v414_v1, %v416_v20 }
  0x54   : > { %904 = vmatmul.mubr.f32.vlgmr.msra.gmra.mrb[0].mxu1 %v462_v24  ;;  %2167 = vmatpush3.bf16.msra.mxu0 %v2166_v21  ;;  %v2832_v19 = vld [vmem:[#allocation2 + $0x48] sm:$0xff]  ;;  %v2835_v21 = vld [vmem:[#allocation2 + $0x50] sm:$0xff]  ;;  %v622_v24 = vld [vmem:[%s3340_s1 + $0x240] sm:$0xff] }
  0x55   : > { %763 = vmatprep.mubr.f32.mxu0 %v407_v29  ;;  %908 = vmatprep.mubr.f32.mxu1 %v2695_v15  ;;  %v2790_v63 = vsel %vm402_vm0, %v409_v27, %v411_v47  ;;  %v623_v25 = vld [vmem:[%s3340_s1 + $0x248] sm:$0xff]  ;;  %v2210_v27 = vpack.c.bf16 %v653_v12, %v652_v11  ;;  %v641_v28 = vld [vmem:[%s3340_s1 + $0x2d8] sm:$0xff]  ;;  %v2212_v29 = vpack.c.bf16 %v671_v16, %v670_v14  ;;  %v418_v32 = vrot.slane %v2832_v19, 1  ;;  %v672_v33 = vld [vmem:[%s3340_s1 + $0x3d0] sm:$0xff] }
  0x56   : > { %2169 = vmatprep.subr.bf16.mxu0 %v2168_v30  ;;  %2199 = vmatpush3.bf16.msra.mxu1 %v2198_v34  ;;  %v654_v30 = vld [vmem:[%s3340_s1 + $0x340] sm:$0xff]  ;;  %v655_v31 = vld [vmem:[%s3340_s1 + $0x348] sm:$0xff]  ;;  %v673_v34 = vld [vmem:[%s3340_s1 + $0x3d8] sm:$0xff]  ;;  %v419_v37 = vrot.slane %v2835_v21, 1  ;;  %v2182_v39 = vpack.c.bf16 %v623_v25, %v622_v24  ;;  %v2184_v40 = vpack.c.bf16 %v641_v28, %v640_v26  ;;  %v475_v53 = vrot.slane %v2832_v19, 2 }
  0x57   : > { %764 = vmatmul.mubr.f32.gmra.mrb[2].mxu0 %v2643_v48  ;;  %2201 = vmatprep.subr.bf16.mxu1 %v2200_v36  ;;  %v413_v48 = vrot.slane %v2753_v45, 1  ;;  %v473_v36 = vrot.slane %v2794_v3, 2  ;;  %v2874_v38 = vld [vmem:[#allocation2 + $0x58] sm:$0x3]  ;;  %v624_v41 = vld [vmem:[%s3340_s1 + $0x250] sm:$0xff]  ;;  %v643_v47 = vld [vmem:[%s3340_s1 + $0x2e8] sm:$0xff] }
  0x58   : > { %909 = vmatmul.mubr.f32.gmra.mrb[2].mxu1 %v464_v43  ;;  %768 = vmatprep.mubr.f32.mxu0 %v2751_v44  ;;  %v625_v42 = vld [vmem:[%s3340_s1 + $0x258] sm:$0xff]  ;;  %v642_v43 = vld [vmem:[%s3340_s1 + $0x2e0] sm:$0xff]  ;;  %v656_v51 = vld [vmem:[%s3340_s1 + $0x350] sm:$0xff]  ;;  %v2910_v59 = vsel %vm402_vm0, %v418_v32, %v419_v37  ;;  %v421_v61 = vrot.slane %v2874_v38, 1  ;;  %v478_v14 = vrot.slane %v2874_v38, 2 }
  0x59   : > { %913 = vmatprep.mubr.f32.mxu1 %v2753_v45  ;;  %2171 = vmatpush3.bf16.msra.mxu0 %v2170_v46  ;;  %v2830_v18 = vsel %vm402_vm0, %v413_v48, %v414_v1  ;;  %v2214_v46 = vpack.c.bf16 %v655_v31, %v654_v30  ;;  %v657_v52 = vld [vmem:[%s3340_s1 + $0x358] sm:$0xff]  ;;  %v674_v56 = vld [vmem:[%s3340_s1 + $0x3e0] sm:$0xff]  ;;  %v2907_v58 = vsel %vm459_vm1, %v471_v13, %v473_v36  ;;  %v2915_v62 = vld [vmem:[#allocation2 + $0x68] sm:$0xff] }
  0x5a   : > { %2173 = vmatprep.subr.bf16.mxu0 %v2172_v50  ;;  %2203 = vmatpush3.bf16.msra.mxu1 %v2202_v55  ;;  %v2216_v50 = vpack.c.bf16 %v673_v34, %v672_v33  ;;  %v476_v55 = vrot.slane %v2835_v21, 2  ;;  %v2912_v48 = vld [vmem:[#allocation2 + $0x60] sm:$0xff]  ;;  %v2186_v0 = vpack.c.bf16 %v625_v42, %v624_v41  ;;  %v2188_v1 = vpack.c.bf16 %v643_v47, %v642_v43  ;;  %v627_v3 = vld [vmem:[%s3340_s1 + $0x268] sm:$0xff]  ;;  %v644_v5 = vld [vmem:[%s3340_s1 + $0x2f0] sm:$0xff] }
  0x5b   : > { %769 = vmatmul.mubr.f32.gmra.mrb[4].mxu0 %v2653_v54  ;;  %2205 = vmatprep.subr.bf16.mxu1 %v2204_v57  ;;  %v470_v54 = vrot.slane %v2753_v45, 2  ;;  %v675_v57 = vld [vmem:[%s3340_s1 + $0x3e8] sm:$0xff]  ;;  %v645_v6 = vld [vmem:[%s3340_s1 + $0x2f8] sm:$0xff]  ;;  %v423_v11 = vrot.slane %v2912_v48, 1  ;;  %v676_v12 = vld [vmem:[%s3340_s1 + $0x3f0] sm:$0xff]  ;;  %v424_v16 = vrot.slane %v2915_v62, 1 }
  0x5c   : > { %914 = vmatmul.mubr.f32.gmra.mrb[4].mxu1 %v2779_v60  ;;  %773 = vmatprep.mubr.f32.mxu0 %v2790_v63  ;;  %v2220_v7 = vpack.c.bf16 %v675_v57, %v674_v56  ;;  %v659_v9 = vld [vmem:[%s3340_s1 + $0x368] sm:$0xff]  ;;  %v362_v20 = vld [vmem:[#allocation2 + $0x70] sm:$0x3]  ;;  %v629_v25 = vld [vmem:[%s3340_s1 + $0x278] sm:$0xff]  ;;  %v480_v32 = vrot.slane %v2912_v48, 2  ;;  %v481_v33 = vrot.slane %v2915_v62, 2  ;;  %v2979_v34 = vsel %vm459_vm1, %v476_v55, %v478_v14 }
  0x5d   : > { %918 = vmatprep.mubr.f32.mxu1 %v2756_v49  ;;  %2175 = vmatpush3.bf16.msra.mxu0 %v2174_v2  ;;  %v626_v2 = vld [vmem:[%s3340_s1 + $0x260] sm:$0xff]  ;;  %v628_v24 = vld [vmem:[%s3340_s1 + $0x270] sm:$0xff]  ;;  %v679_v31 = vld [vmem:[%s3340_s1 + $0x408] sm:$0xff]  ;;  %v2982_v36 = vsel %vm402_vm0, %v423_v11, %v424_v16 }
  0x5e   : > { %2177 = vmatprep.subr.bf16.mxu0 %v2176_v4  ;;  %2207 = vmatpush3.bf16.msra.mxu1 %v2206_v8  ;;  %v2218_v4 = vpack.c.bf16 %v657_v52, %v656_v51  ;;  %v658_v8 = vld [vmem:[%s3340_s1 + $0x360] sm:$0xff]  ;;  %v2194_v38 = vpack.c.bf16 %v629_v25, %v628_v24  ;;  %v365_v52 = vld [vmem:[#allocation2 + $0x88] sm:$0x3] }
  0x5f   : > { %774 = vmatmul.mubr.f32.gmra.mrb[6].mxu0 %v2695_v15  ;;  %2209 = vmatprep.subr.bf16.mxu1 %v2208_v10  ;;  %v2859_v15 = vsel %vm459_vm1, %v470_v54, %v471_v13  ;;  %v2939_v10 = vsel %vm459_vm1, %v475_v53, %v476_v55  ;;  %v677_v54 = vld [vmem:[%s3340_s1 + $0x3f8] sm:$0xff]  ;;  %v2950_v13 = vsel %vm402_vm0, %v419_v37, %v421_v61  ;;  %v678_v30 = vld [vmem:[%s3340_s1 + $0x400] sm:$0xff]  ;;  %v426_v37 = vrot.slane %v362_v20, 1  ;;  %v3044_v14 = vld [vmem:[#allocation2 + $0xa8] sm:$0xff] }
  0x60   : > { %919 = vmatmul.mubr.f32.gmra.mrb[6].mxu1 %v2827_v17  ;;  %778 = vmatprep.mubr.f32.mxu0 %v2830_v18  ;;  %v2222_v26 = vpack.c.bf16 %v659_v9, %v658_v8  ;;  %v2224_v28 = vpack.c.bf16 %v677_v54, %v676_v12  ;;  %v2988_v42 = vpack.c.bf16 %v679_v31, %v678_v30  ;;  %v431_v61 = vrot.slane %v365_v52, 1 }
  0x61   : > { %923 = vmatprep.mubr.f32.mxu1 %v2832_v19  ;;  %2179 = vmatpush3.bf16.msra.mxu0 %v2178_v22  ;;  %v2190_v22 = vpack.c.bf16 %v627_v3, %v626_v2  ;;  %v2999_v47 = vsel %vm402_vm0, %v424_v16, %v426_v37  ;;  %v3046_v16 = vld [vmem:[#allocation2 + $0xb0] sm:$0xff] }
  0x62   : > { %2181 = vmatprep.subr.bf16.mxu0 %v2180_v23  ;;  %2211 = vmatpush3.bf16.msra.mxu1 %v2210_v27  ;;  %v2192_v23 = vpack.c.bf16 %v645_v6, %v644_v5  ;;  %v660_v27 = vld [vmem:[%s3340_s1 + $0x370] sm:$0xff]  ;;  %v488_v5 = vrot.slane %v365_v52, 2  ;;  %v439_v25 = vrot.slane %v3046_v16, 1  ;;  %v496_v30 = vrot.slane %v3046_v16, 2 }
  0x63   : > { %779 = vmatmul.mubr.f32.gmra.mrb[8].mxu0 %v2753_v45  ;;  %2213 = vmatprep.subr.bf16.mxu1 %v2212_v29  ;;  %v661_v29 = vld [vmem:[%s3340_s1 + $0x378] sm:$0xff] }
  0x64   : > { %924 = vmatmul.mubr.f32.gmra.mrb[8].mxu1 %v2859_v15  ;;  %783 = vmatprep.mubr.f32.mxu0 %v2870_v35  ;;  %v2226_v41 = vpack.c.bf16 %v661_v29, %v660_v27  ;;  %v495_v27 = vrot.slane %v3044_v14, 2 }
  0x65   : > { %928 = vmatprep.mubr.f32.mxu1 %v2835_v21  ;;  %2183 = vmatpush3.bf16.msra.mxu0 %v2182_v39  ;;  %v2984_v39 = vld [vmem:[#allocation2 + $0x78] sm:$0xff] }
  0x66   : > { %2185 = vmatprep.subr.bf16.mxu0 %v2184_v40  ;;  %2215 = vmatpush3.bf16.msra.mxu1 %v2214_v46  ;;  %v2986_v40 = vld [vmem:[#allocation2 + $0x80] sm:$0xff]  ;;  %v428_v43 = vrot.slane %v2984_v39, 1  ;;  %v2996_v46 = vsel %vm459_vm1, %v480_v32, %v481_v33  ;;  %v485_v53 = vrot.slane %v2984_v39, 2 }
  0x67   : > { %784 = vmatmul.mubr.f32.gmra.mrb[10].mxu0 %v2756_v49  ;;  %2217 = vmatprep.subr.bf16.mxu1 %v2216_v50  ;;  %v483_v50 = vrot.slane %v362_v20, 2  ;;  %v429_v51 = vrot.slane %v2986_v40, 1  ;;  %v486_v57 = vrot.slane %v2986_v40, 2  ;;  %v438_v20 = vrot.slane %v3044_v14, 1  ;;  %v3072_v32 = vld [vmem:[#allocation2 + $0xc0] sm:$0xff] }
  0x68   : > { %929 = vmatmul.mubr.f32.gmra.mrb[10].mxu1 %v2907_v58  ;;  %788 = vmatprep.mubr.f32.mxu0 %v2910_v59 }
  0x69   : > { %933 = vmatprep.mubr.f32.mxu1 %v2912_v48  ;;  %2187 = vmatpush3.bf16.msra.mxu0 %v2186_v0  ;;  %v3010_v55 = vsel %vm459_vm1, %v481_v33, %v483_v50  ;;  %v3013_v56 = vsel %vm402_vm0, %v428_v43, %v429_v51  ;;  %v3016_v0 = vld [vmem:[#allocation2 + $0x90] sm:$0xff]  ;;  %v3026_v3 = vsel %vm459_vm1, %v485_v53, %v486_v57  ;;  %v682_v53 = vld [vmem:[%s3340_s1 + $0x420] sm:$0xff] }
  0x6a   : > { %2189 = vmatprep.subr.bf16.mxu0 %v2188_v1  ;;  %2219 = vmatpush3.bf16.msra.mxu1 %v2218_v4  ;;  %v3018_v1 = vld [vmem:[#allocation2 + $0x98] sm:$0xff]  ;;  %v433_v2 = vrot.slane %v3016_v0, 1  ;;  %v3029_v4 = vsel %vm402_vm0, %v429_v51, %v431_v61  ;;  %v490_v8 = vrot.slane %v3016_v0, 2  ;;  %v3038_v9 = vsel %vm459_vm1, %v486_v57, %v488_v5  ;;  %v680_v50 = vld [vmem:[%s3340_s1 + $0x410] sm:$0xff]  ;;  %v683_v57 = vld [vmem:[%s3340_s1 + $0x428] sm:$0xff] }
  0x6b   : > { %789 = vmatmul.mubr.f32.gmra.mrb[12].mxu0 %v2832_v19  ;;  %2221 = vmatprep.subr.bf16.mxu1 %v2220_v7  ;;  %v434_v6 = vrot.slane %v3018_v1, 1  ;;  %v368_v7 = vld [vmem:[#allocation2 + $0xa0] sm:$0x3]  ;;  %v491_v12 = vrot.slane %v3018_v1, 2  ;;  %v3069_v29 = vsel %vm402_vm0, %v438_v20, %v439_v25  ;;  %v3079_v33 = vsel %vm459_vm1, %v495_v27, %v496_v30  ;;  %v681_v51 = vld [vmem:[%s3340_s1 + $0x418] sm:$0xff] }
  0x6c   : > { %934 = vmatmul.mubr.f32.gmra.mrb[12].mxu1 %v2939_v10  ;;  %793 = vmatprep.mubr.f32.mxu0 %v2950_v13  ;;  %v436_v54 = vrot.slane %v368_v7, 1  ;;  %v493_v24 = vrot.slane %v368_v7, 2  ;;  %v2232_v52 = vpack.c.bf16 %v681_v51, %v680_v50  ;;  %v689_v61 = vld [vmem:[%s3340_s1 + $0x458] sm:$0xff] }
  0x6d   : > { %938 = vmatprep.mubr.f32.mxu1 %v2915_v62  ;;  %2191 = vmatpush3.bf16.msra.mxu0 %v2190_v22  ;;  %v3041_v11 = vsel %vm402_vm0, %v433_v2, %v434_v6  ;;  %v3054_v22 = vsel %vm459_vm1, %v490_v8, %v491_v12  ;;  %v691_v2 = vld [vmem:[%s3340_s1 + $0x468] sm:$0xff]  ;;  %v693_v5 = vld [vmem:[%s3340_s1 + $0x478] sm:$0xff] }
  0x6e   : > { %2193 = vmatprep.subr.bf16.mxu0 %v2192_v23  ;;  %2223 = vmatpush3.bf16.msra.mxu1 %v2222_v26  ;;  %v3057_v23 = vsel %vm402_vm0, %v434_v6, %v436_v54  ;;  %v371_v26 = vld [vmem:[#allocation2 + $0xb8] sm:$0x3]  ;;  %v377_v8 = vld [vmem:[#allocation2 + $0xe8] sm:$0x3] }
  0x6f   : > { %794 = vmatmul.mubr.f32.gmra.mrb[14].mxu0 %v2835_v21  ;;  %2225 = vmatprep.subr.bf16.mxu1 %v2224_v28  ;;  %v3066_v28 = vsel %vm459_vm1, %v491_v12, %v493_v24  ;;  %v441_v31 = vrot.slane %v371_v26, 1 }
  0x70   : > { %939 = vmatmul.mubr.f32.gmra.mrb[14].mxu1 %v2979_v34  ;;  %798 = vmatprep.mubr.f32.mxu0 %v2982_v36 }
  0x71   : > { %943 = vmatprep.mubr.f32.mxu1 %v2984_v39  ;;  %2195 = vmatpush3.bf16.msra.mxu0 %v2194_v38  ;;  %v3082_v37 = vsel %vm402_vm0, %v439_v25, %v441_v31  ;;  %v498_v38 = vrot.slane %v371_v26, 2 }
  0x72   : > { %2227 = vmatpush3.bf16.msra.mxu1 %v2226_v41  ;;  %2229 = vmatprep.subr.bf16.mxu0 %v2988_v42  ;;  %v3084_v41 = vld [vmem:[#allocation2 + $0xc8] sm:$0xff] }
  0x73   : > { %799 = vmatmul.mubr.f32.gmra.mrb[16].mxu0 %v2912_v48  ;;  %2260 = vmatprep.subr.bf16.mxu1 %v2988_v42  ;;  %v3091_v43 = vsel %vm459_vm1, %v496_v30, %v498_v38 }
  0x74   : > { %944 = vmatmul.mubr.f32.gmra.mrb[16].mxu1 %v2996_v46  ;;  %803 = vmatprep.mubr.f32.mxu0 %v2999_v47 }
  0x75   : > { %948 = vmatprep.mubr.f32.mxu1 %v2986_v40 }
  0x77   : > { %804 = vmatmul.mubr.f32.gmra.mrb[18].mxu0 %v2915_v62 }
  0x78   : > { %949 = vmatmul.mubr.f32.gmra.mrb[18].mxu1 %v3010_v55  ;;  %808 = vmatprep.mubr.f32.mxu0 %v3013_v56 }
  0x79   : > { %953 = vmatprep.mubr.f32.mxu1 %v3016_v0 }
  0x7b   : > { %809 = vmatmul.mubr.f32.gmra.mrb[20].mxu0 %v2984_v39 }
  0x7c   : > { %954 = vmatmul.mubr.f32.gmra.mrb[20].mxu1 %v3026_v3  ;;  %813 = vmatprep.mubr.f32.mxu0 %v3029_v4 }
  0x7d   : > { %958 = vmatprep.mubr.f32.mxu1 %v3018_v1 }
  0x7f   : > { %814 = vmatmul.mubr.f32.gmra.mrb[22].mxu0 %v2986_v40 }
  0x80   : > { %959 = vmatmul.mubr.f32.gmra.mrb[22].mxu1 %v3038_v9  ;;  %818 = vmatprep.mubr.f32.mxu0 %v3041_v11 }
  0x81   : > { %963 = vmatprep.mubr.f32.mxu1 %v3044_v14 }
  0x83   : > { %819 = vmatmul.mubr.f32.gmra.mrb[24].mxu0 %v3016_v0 }
  0x84   : > { %964 = vmatmul.mubr.f32.gmra.mrb[24].mxu1 %v3054_v22  ;;  %823 = vmatprep.mubr.f32.mxu0 %v3057_v23 }
  0x85   : > { %968 = vmatprep.mubr.f32.mxu1 %v3046_v16 }
  0x87   : > { %824 = vmatmul.mubr.f32.gmra.mrb[26].mxu0 %v3018_v1 }
  0x88   : > { %969 = vmatmul.mubr.f32.gmra.mrb[26].mxu1 %v3066_v28  ;;  %828 = vmatprep.mubr.f32.mxu0 %v3069_v29 }
  0x89   : > { %973 = vmatprep.mubr.f32.mxu1 %v3072_v32 }
  0x8b   : > { %829 = vmatmul.mubr.f32.gmra.mrb[28].mxu0 %v3044_v14 }
  0x8c   : > { %974 = vmatmul.mubr.f32.gmra.mrb[28].mxu1 %v3079_v33  ;;  %833 = vmatprep.mubr.f32.mxu0 %v3082_v37 }
  0x8d   : > { %978 = vmatprep.mubr.f32.mxu1 %v3084_v41 }
  0x8f   : > { %834 = vmatmul.mubr.f32.gmra.mrb[30].mxu0 %v3046_v16 }
  0x90   : > { %979 = vmatmul.mubr.f32.gmra.mrb[30].mxu1 %v3091_v43  ;;  %1048 = vmatprep.mubr.f32.mxu0 %v2779_v60  ;;  %v2236_v60 = vpack.c.bf16 %v683_v57, %v682_v53 }
  0x91   : > { %1193 = vmatprep.mubr.f32.mxu1 %v2830_v18 }
  0x93   : > { %1049 = vmatmul.mubr.f32.vlgmr.msra.gmra.mrb[32].mxu0 %v2751_v44  ;;  %v684_v44 = vld [vmem:[%s3340_s1 + $0x430] sm:$0xff] }
  0x94   : > { %1194 = vmatmul.mubr.f32.vlgmr.msra.gmra.mrb[32].mxu1 %v2753_v45  ;;  %2231 = vmatpush3.bf16.msra.mxu0 %v2988_v42  ;;  %v685_v45 = vld [vmem:[%s3340_s1 + $0x438] sm:$0xff] }
  0x95   : > { %1053 = vmatprep.mubr.f32.mxu0 %v2827_v17  ;;  %1198 = vmatprep.mubr.f32.mxu1 %v2870_v35  ;;  %v2240_v17 = vpack.c.bf16 %v685_v45, %v684_v44 }
  0x96   : > { %2233 = vmatprep.subr.bf16.mxu0 %v2232_v52  ;;  %2268 = vmatpush3.bf16.msra.mxu1 %v2988_v42  ;;  %v687_v42 = vld [vmem:[%s3340_s1 + $0x448] sm:$0xff] }
  0x97   : > { %1054 = vmatmul.mubr.f32.gmra.mrb[34].mxu0 %v2790_v63  ;;  %2261 = vmatprep.subr.bf16.mxu1 %v2232_v52  ;;  %v686_v63 = vld [vmem:[%s3340_s1 + $0x440] sm:$0xff] }
  0x98   : > { %1199 = vmatmul.mubr.f32.gmra.mrb[34].mxu1 %v2756_v49  ;;  %1058 = vmatprep.mubr.f32.mxu0 %v2859_v15  ;;  %v2244_v49 = vpack.c.bf16 %v687_v42, %v686_v63 }
  0x99   : > { %1203 = vmatprep.mubr.f32.mxu1 %v2910_v59  ;;  %2235 = vmatpush3.bf16.msra.mxu0 %v2232_v52 }
  0x9a   : > { %2237 = vmatprep.subr.bf16.mxu0 %v2236_v60  ;;  %2269 = vmatpush3.bf16.msra.mxu1 %v2232_v52 }
  0x9b   : > { %1059 = vmatmul.mubr.f32.gmra.mrb[36].mxu0 %v2830_v18  ;;  %2262 = vmatprep.subr.bf16.mxu1 %v2236_v60  ;;  %v688_v18 = vld [vmem:[%s3340_s1 + $0x450] sm:$0xff] }
  0x9c   : > { %1204 = vmatmul.mubr.f32.gmra.mrb[36].mxu1 %v2832_v19  ;;  %1063 = vmatprep.mubr.f32.mxu0 %v2907_v58  ;;  %v2248_v19 = vpack.c.bf16 %v689_v61, %v688_v18 }
  0x9d   : > { %1208 = vmatprep.mubr.f32.mxu1 %v2950_v13  ;;  %2239 = vmatpush3.bf16.msra.mxu0 %v2236_v60 }
  0x9e   : > { %2241 = vmatprep.subr.bf16.mxu0 %v2240_v17  ;;  %2270 = vmatpush3.bf16.msra.mxu1 %v2236_v60 }
  0x9f   : > { %1064 = vmatmul.mubr.f32.gmra.mrb[38].mxu0 %v2870_v35  ;;  %2263 = vmatprep.subr.bf16.mxu1 %v2240_v17  ;;  %v690_v35 = vld [vmem:[%s3340_s1 + $0x460] sm:$0xff] }
  0xa0   : > { %1209 = vmatmul.mubr.f32.gmra.mrb[38].mxu1 %v2835_v21  ;;  %1068 = vmatprep.mubr.f32.mxu0 %v2939_v10  ;;  %v2252_v21 = vpack.c.bf16 %v691_v2, %v690_v35 }
  0xa1   : > { %1213 = vmatprep.mubr.f32.mxu1 %v2982_v36  ;;  %2243 = vmatpush3.bf16.msra.mxu0 %v2240_v17 }
  0xa2   : > { %2245 = vmatprep.subr.bf16.mxu0 %v2244_v49  ;;  %2271 = vmatpush3.bf16.msra.mxu1 %v2240_v17 }
  0xa3   : > { %1069 = vmatmul.mubr.f32.gmra.mrb[40].mxu0 %v2910_v59  ;;  %2264 = vmatprep.subr.bf16.mxu1 %v2244_v49  ;;  %v692_v59 = vld [vmem:[%s3340_s1 + $0x470] sm:$0xff] }
  0xa4   : > { %1214 = vmatmul.mubr.f32.gmra.mrb[40].mxu1 %v2912_v48  ;;  %1073 = vmatprep.mubr.f32.mxu0 %v2979_v34  ;;  %v2256_v48 = vpack.c.bf16 %v693_v5, %v692_v59 }
  0xa5   : > { %1218 = vmatprep.mubr.f32.mxu1 %v2999_v47  ;;  %2247 = vmatpush3.bf16.msra.mxu0 %v2244_v49 }
  0xa6   : > { %2249 = vmatprep.subr.bf16.mxu0 %v2248_v19  ;;  %2272 = vmatpush3.bf16.msra.mxu1 %v2244_v49 }
  0xa7   : > { %1074 = vmatmul.mubr.f32.gmra.mrb[42].mxu0 %v2950_v13  ;;  %2265 = vmatprep.subr.bf16.mxu1 %v2248_v19  ;;  %v520_v13 = vrot.slane %v3084_v41, 1 }
  0xa8   : > { %1219 = vmatmul.mubr.f32.gmra.mrb[42].mxu1 %v2915_v62  ;;  %1078 = vmatprep.mubr.f32.mxu0 %v2996_v46  ;;  %v519_v62 = vrot.slane %v3072_v32, 1 }
  0xa9   : > { %1223 = vmatprep.mubr.f32.mxu1 %v3013_v56  ;;  %2251 = vmatpush3.bf16.msra.mxu0 %v2248_v19 }
  0xaa   : > { %2253 = vmatprep.subr.bf16.mxu0 %v2252_v21  ;;  %2273 = vmatpush3.bf16.msra.mxu1 %v2248_v19 }
  0xab   : > { %1079 = vmatmul.mubr.f32.gmra.mrb[44].mxu0 %v2982_v36  ;;  %2266 = vmatprep.subr.bf16.mxu1 %v2252_v21  ;;  %v374_v36 = vld [vmem:[#allocation2 + $0xd0] sm:$0x3] }
  0xac   : > { %1224 = vmatmul.mubr.f32.gmra.mrb[44].mxu1 %v2984_v39  ;;  %1083 = vmatprep.mubr.f32.mxu0 %v3010_v55  ;;  %v521_v39 = vsel %vm402_vm0, %v519_v62, %v520_v13  ;;  %v529_v12 = vrot.slane %v374_v36, 2 }
  0xad   : > { %1228 = vmatprep.mubr.f32.mxu1 %v3029_v4  ;;  %2255 = vmatpush3.bf16.msra.mxu0 %v2252_v21 }
  0xae   : > { %2257 = vmatprep.subr.bf16.mxu0 %v2256_v48  ;;  %2274 = vmatpush3.bf16.msra.mxu1 %v2252_v21 }
  0xaf   : > { %1084 = vmatmul.mubr.f32.gmra.mrb[46].mxu0 %v2999_v47  ;;  %2267 = vmatprep.subr.bf16.mxu1 %v2256_v48  ;;  %v375_v47 = vld [vmem:[#allocation2 + $0xd8] sm:$0xff] }
  0xb0   : > { %1229 = vmatmul.mubr.f32.gmra.mrb[46].mxu1 %v2986_v40  ;;  %1088 = vmatprep.mubr.f32.mxu0 %v3026_v3  ;;  %v522_v40 = vrot.slane %v374_v36, 1  ;;  %v536_v6 = vrot.slane %v375_v47, 1 }
  0xb1   : > { %1233 = vmatprep.mubr.f32.mxu1 %v3041_v11  ;;  %2259 = vmatpush3.bf16.msra.mxu0 %v2256_v48 }
  0xb2   : > { %2275 = vmatpush3.bf16.msra.mxu1 %v2256_v48 }
  0xb3   : > { %1089 = vmatmul.mubr.f32.gmra.mrb[48].mxu0 %v3013_v56  ;;  %v376_v56 = vld [vmem:[#allocation2 + $0xe0] sm:$0xff] }
  0xb4   : > { %1234 = vmatmul.mubr.f32.gmra.mrb[48].mxu1 %v3016_v0  ;;  %1093 = vmatprep.mubr.f32.mxu0 %v3038_v9  ;;  %v526_v0 = vrot.slane %v3072_v32, 2  ;;  %v537_v7 = vrot.slane %v376_v56, 1  ;;  %v544_v24 = vrot.slane %v376_v56, 2 }
  0xb5   : > { %1238 = vmatprep.mubr.f32.mxu1 %v3057_v23 }
  0xb6   : > { %v538_v54 = vsel %vm402_vm0, %v536_v6, %v537_v7 }
  0xb7   : > { %1094 = vmatmul.mubr.f32.gmra.mrb[50].mxu0 %v3029_v4  ;;  %v523_v4 = vsel %vm402_vm0, %v520_v13, %v522_v40 }
  0xb8   : > { %1239 = vmatmul.mubr.f32.gmra.mrb[50].mxu1 %v3018_v1  ;;  %1098 = vmatprep.mubr.f32.mxu0 %v3054_v22  ;;  %v527_v1 = vrot.slane %v3084_v41, 2 }
  0xb9   : > { %1243 = vmatprep.mubr.f32.mxu1 %v3069_v29 }
  0xbb   : > { %1099 = vmatmul.mubr.f32.gmra.mrb[52].mxu0 %v3041_v11  ;;  %v528_v11 = vsel %vm459_vm1, %v526_v0, %v527_v1 }
  0xbc   : > { %1244 = vmatmul.mubr.f32.gmra.mrb[52].mxu1 %v3044_v14  ;;  %1103 = vmatprep.mubr.f32.mxu0 %v3066_v28  ;;  %v539_v14 = vrot.slane %v377_v8, 1 }
  0xbd   : > { %1248 = vmatprep.mubr.f32.mxu1 %v3082_v37 }
  0xbe   : > { %v540_v20 = vsel %vm402_vm0, %v537_v7, %v539_v14 }
  0xbf   : > { %1104 = vmatmul.mubr.f32.gmra.mrb[54].mxu0 %v3057_v23  ;;  %v543_v23 = vrot.slane %v375_v47, 2 }
  0xc0   : > { %1249 = vmatmul.mubr.f32.gmra.mrb[54].mxu1 %v3046_v16  ;;  %1108 = vmatprep.mubr.f32.mxu0 %v3079_v33  ;;  %v530_v16 = vsel %vm459_vm1, %v527_v1, %v529_v12 }
  0xc1   : > { %1253 = vmatprep.mubr.f32.mxu1 %v521_v39 }
  0xc3   : > { %1109 = vmatmul.mubr.f32.gmra.mrb[56].mxu0 %v3069_v29 }
  0xc4   : > { %1254 = vmatmul.mubr.f32.gmra.mrb[56].mxu1 %v3072_v32  ;;  %1113 = vmatprep.mubr.f32.mxu0 %v3091_v43 }
  0xc5   : > { %1258 = vmatprep.mubr.f32.mxu1 %v523_v4 }
  0xc7   : > { %1114 = vmatmul.mubr.f32.gmra.mrb[58].mxu0 %v3082_v37 }
  0xc8   : > { %1259 = vmatmul.mubr.f32.gmra.mrb[58].mxu1 %v3084_v41  ;;  %1118 = vmatprep.mubr.f32.mxu0 %v528_v11 }
  0xc9   : > { %1263 = vmatprep.mubr.f32.mxu1 %v538_v54 }
  0xcb   : > { %1119 = vmatmul.mubr.f32.gmra.mrb[60].mxu0 %v521_v39 }
  0xcc   : > { %1264 = vmatmul.mubr.f32.gmra.mrb[60].mxu1 %v375_v47  ;;  %1123 = vmatprep.mubr.f32.mxu0 %v530_v16 }
  0xcd   : > { %1268 = vmatprep.mubr.f32.mxu1 %v540_v20 }
  0xcf   : > { %1124 = vmatmul.mubr.f32.gmra.mrb[62].mxu0 %v523_v4 }
  0xd0   : > { %1269 = vmatmul.mubr.f32.gmra.mrb[62].mxu1 %v376_v56  ;;  %2076 = vmatprep.mubr.f32.mxu0 %v2859_v15  ;;  %v546_v15 = vrot.slane %v377_v8, 2 }
  0xd1   : > { %2088 = vmatprep.mubr.f32.mxu1 %v3054_v22  ;;  %v545_v22 = vsel %vm459_vm1, %v543_v23, %v544_v24 }
  0xd3   : > { %2077 = vmatmul.mubr.f32.vlgmr.msra.gmra.mrb[64].mxu0 %v2907_v58  ;;  %v547_v58 = vsel %vm459_vm1, %v544_v24, %v546_v15 }
  0xd4   : > { %2089 = vmatmul.mubr.f32.vlgmr.msra.gmra.mrb[64].mxu1 %v3066_v28  ;;  %2079 = vmatprep.mubr.f32.mxu0 %v2939_v10 }
  0xd5   : > { %2091 = vmatprep.mubr.f32.mxu1 %v3079_v33 }
  0xd7   : > { %2080 = vmatmul.mubr.f32.gmra.mrb[66].mxu0 %v2979_v34 }
  0xd8   : > { %2092 = vmatmul.mubr.f32.gmra.mrb[66].mxu1 %v3091_v43  ;;  %2082 = vmatprep.mubr.f32.mxu0 %v2996_v46 }
  0xd9   : > { %2094 = vmatprep.mubr.f32.mxu1 %v528_v11 }
  0xdb   : > { %2083 = vmatmul.mubr.f32.gmra.mrb[68].mxu0 %v3010_v55 }
  0xdc   : > { %2095 = vmatmul.mubr.f32.gmra.mrb[68].mxu1 %v530_v16  ;;  %2085 = vmatprep.mubr.f32.mxu0 %v3026_v3 }
  0xdd   : > { %2097 = vmatprep.mubr.f32.mxu1 %v545_v22 }
  0xdf   : > { %2086 = vmatmul.mubr.f32.gmra.mrb[70].mxu0 %v3038_v9 }
  0xe0   : > { %2098 = vmatmul.mubr.f32.gmra.mrb[70].mxu1 %v547_v58 }
 0x126   : > { %v1724_v10 = vpop.f32.mrb[0].mxu0 }
 0x127   : > { %v1804_v34 = vpop.f32.mrb[0].mxu1  ;;  %v1725_v25 = vpop.f32.mrb[1].mxu0 }
 0x128   : > { %v1726_v26 = vadd.f32 %v1725_v25, %v1724_v10  ;;  %v1805_v46 = vpop.f32.mrb[1].mxu1 }
 0x129   : > { %v1806_v27 = vadd.f32 %v1805_v46, %v1804_v34 }
 0x12a   : > { %v1727_v28 = vpop.f32.mrb[2].mxu0 }
 0x12b   : > { %v3217_v29 = vadd.f32 %v1806_v27, %v1726_v26  ;;  %v1807_v30 = vpop.f32.mrb[2].mxu1  ;;  %v1728_v55 = vpop.f32.mrb[3].mxu0 }
 0x12c   : > { %v1729_v31 = vadd.f32 %v1728_v55, %v1727_v28  ;;  %v1808_v32 = vpop.f32.mrb[3].mxu1 }
 0x12d   : > { %v1809_v3 = vadd.f32 %v1808_v32, %v1807_v30 }
 0x12e   : > { %v1730_v33 = vpop.f32.mrb[4].mxu0 }
 0x12f   : > { %v3219_v37 = vadd.f32 %v1809_v3, %v1729_v31  ;;  %v1810_v38 = vpop.f32.mrb[4].mxu1  ;;  %v1731_v9 = vpop.f32.mrb[5].mxu0 }
 0x130   : > { %v1732_v41 = vadd.f32 %v1731_v9, %v1730_v33  ;;  %v1811_v43 = vpop.f32.mrb[5].mxu1 }
 0x131   : > { %v1812_v50 = vadd.f32 %v1811_v43, %v1810_v38 }
 0x132   : > { %v1733_v51 = vpop.f32.mrb[6].mxu0 }
 0x133   : > { %v3221_v52 = vadd.f32 %v1812_v50, %v1732_v41  ;;  %v1813_v53 = vpop.f32.mrb[6].mxu1  ;;  %v1734_v57 = vpop.f32.mrb[7].mxu0 }
 0x134   : > { %v1735_v60 = vadd.f32 %v1734_v57, %v1733_v51  ;;  %v1814_v44 = vpop.f32.mrb[7].mxu1 }
 0x135   : > { %v1815_v45 = vadd.f32 %v1814_v44, %v1813_v53 }
 0x136   : > { %v1736_v17 = vpop.f32.mrb[8].mxu0 }
 0x137   : > { %v3223_v63 = vadd.f32 %v1815_v45, %v1735_v60  ;;  %v1816_v42 = vpop.f32.mrb[8].mxu1  ;;  %v1737_v49 = vpop.f32.mrb[9].mxu0 }
 0x138   : > { %v1738_v18 = vadd.f32 %v1737_v49, %v1736_v17  ;;  %v1817_v61 = vpop.f32.mrb[9].mxu1 }
 0x139   : > { %v1818_v19 = vadd.f32 %v1817_v61, %v1816_v42 }
 0x13a   : > { %v1739_v35 = vpop.f32.mrb[10].mxu0 }
 0x13b   : > { %v3225_v2 = vadd.f32 %v1818_v19, %v1738_v18  ;;  %v1819_v21 = vpop.f32.mrb[10].mxu1  ;;  %v1740_v59 = vpop.f32.mrb[11].mxu0 }
 0x13c   : > { %v1741_v5 = vadd.f32 %v1740_v59, %v1739_v35  ;;  %v1820_v48 = vpop.f32.mrb[11].mxu1 }
 0x13d   : > { %v1821_v62 = vadd.f32 %v1820_v48, %v1819_v21 }
 0x13e   : > { %v1742_v13 = vpop.f32.mrb[12].mxu0 }
 0x13f   : > { %v3227_v36 = vadd.f32 %v1821_v62, %v1741_v5  ;;  %v1822_v39 = vpop.f32.mrb[12].mxu1  ;;  %v1743_v40 = vpop.f32.mrb[13].mxu0 }
 0x140   : > { %v1744_v47 = vadd.f32 %v1743_v40, %v1742_v13  ;;  %v1823_v56 = vpop.f32.mrb[13].mxu1 }
 0x141   : > { %v1824_v0 = vadd.f32 %v1823_v56, %v1822_v39 }
 0x142   : > { %v1745_v1 = vpop.f32.mrb[14].mxu0 }
 0x143   : > { %v3229_v4 = vadd.f32 %v1824_v0, %v1744_v47  ;;  %v1825_v6 = vpop.f32.mrb[14].mxu1  ;;  %v1746_v7 = vpop.f32.mrb[15].mxu0 }
 0x144   : > { %v1747_v8 = vadd.f32 %v1746_v7, %v1745_v1  ;;  %v1826_v11 = vpop.f32.mrb[15].mxu1 }
 0x145   : > { %v1827_v12 = vadd.f32 %v1826_v11, %v1825_v6 }
 0x146   : > { %v1748_v54 = vpop.f32.mrb[16].mxu0 }
 0x147   : > { %v3231_v14 = vadd.f32 %v1827_v12, %v1747_v8  ;;  %v1828_v16 = vpop.f32.mrb[16].mxu1  ;;  %v1749_v20 = vpop.f32.mrb[17].mxu0 }
 0x148   : > { %v1750_v23 = vadd.f32 %v1749_v20, %v1748_v54  ;;  %v1829_v24 = vpop.f32.mrb[17].mxu1 }
 0x149   : > { %v1830_v15 = vadd.f32 %v1829_v24, %v1828_v16 }
 0x14a   : > { %v1751_v22 = vpop.f32.mrb[18].mxu0 }
 0x14b   : > { %v3233_v58 = vadd.f32 %v1830_v15, %v1750_v23  ;;  %v1831_v10 = vpop.f32.mrb[18].mxu1  ;;  %v1752_v34 = vpop.f32.mrb[19].mxu0 }
 0x14c   : > { %v1753_v25 = vadd.f32 %v1752_v34, %v1751_v22  ;;  %v1832_v26 = vpop.f32.mrb[19].mxu1 }
 0x14d   : > { %v1833_v46 = vadd.f32 %v1832_v26, %v1831_v10 }
 0x14e   : > { %v1754_v27 = vpop.f32.mrb[20].mxu0 }
 0x14f   : > { %v3235_v28 = vadd.f32 %v1833_v46, %v1753_v25  ;;  %v1834_v30 = vpop.f32.mrb[20].mxu1  ;;  %v1755_v55 = vpop.f32.mrb[21].mxu0 }
 0x150   : > { %v1756_v31 = vadd.f32 %v1755_v55, %v1754_v27  ;;  %v1835_v32 = vpop.f32.mrb[21].mxu1 }
 0x151   : > { %v1836_v3 = vadd.f32 %v1835_v32, %v1834_v30 }
 0x152   : > { %v1757_v33 = vpop.f32.mrb[22].mxu0 }
 0x153   : > { %v3237_v38 = vadd.f32 %v1836_v3, %v1756_v31  ;;  %v1837_v9 = vpop.f32.mrb[22].mxu1  ;;  %v1758_v41 = vpop.f32.mrb[23].mxu0 }
 0x154   : > { %v1759_v43 = vadd.f32 %v1758_v41, %v1757_v33  ;;  %v1838_v50 = vpop.f32.mrb[23].mxu1 }
 0x155   : > { %v1839_v51 = vadd.f32 %v1838_v50, %v1837_v9 }
 0x156   : > { %v1760_v53 = vpop.f32.mrb[24].mxu0 }
 0x157   : > { %v3239_v57 = vadd.f32 %v1839_v51, %v1759_v43  ;;  %v1840_v60 = vpop.f32.mrb[24].mxu1  ;;  %v1761_v44 = vpop.f32.mrb[25].mxu0 }
 0x158   : > { %v1762_v45 = vadd.f32 %v1761_v44, %v1760_v53  ;;  %v1841_v17 = vpop.f32.mrb[25].mxu1 }
 0x159   : > { %v1842_v42 = vadd.f32 %v1841_v17, %v1840_v60 }
 0x15a   : > { %v1763_v49 = vpop.f32.mrb[26].mxu0 }
 0x15b   : > { %v3241_v18 = vadd.f32 %v1842_v42, %v1762_v45  ;;  %v1843_v61 = vpop.f32.mrb[26].mxu1  ;;  %v1764_v19 = vpop.f32.mrb[27].mxu0 }
 0x15c   : > { %v1765_v35 = vadd.f32 %v1764_v19, %v1763_v49  ;;  %v1844_v21 = vpop.f32.mrb[27].mxu1 }
 0x15d   : > { %v1845_v59 = vadd.f32 %v1844_v21, %v1843_v61 }
 0x15e   : > { %v1766_v5 = vpop.f32.mrb[28].mxu0 }
 0x15f   : > { %v3243_v48 = vadd.f32 %v1845_v59, %v1765_v35  ;;  %v1846_v62 = vpop.f32.mrb[28].mxu1  ;;  %v1767_v13 = vpop.f32.mrb[29].mxu0 }
 0x160   : > { %v1768_v39 = vadd.f32 %v1767_v13, %v1766_v5  ;;  %v1847_v40 = vpop.f32.mrb[29].mxu1 }
 0x161   : > { %v1848_v47 = vadd.f32 %v1847_v40, %v1846_v62 }
 0x162   : > { %v1769_v56 = vpop.f32.mrb[30].mxu0 }
 0x163   : > { %v3245_v0 = vadd.f32 %v1848_v47, %v1768_v39  ;;  %v1849_v1 = vpop.f32.mrb[30].mxu1  ;;  %v1770_v6 = vpop.f32.mrb[31].mxu0 }
 0x164   : > { %v1771_v7 = vadd.f32 %v1770_v6, %v1769_v56  ;;  %v1850_v8 = vpop.f32.mrb[31].mxu1 }
 0x165   : > { %v1851_v11 = vadd.f32 %v1850_v8, %v1849_v1 }
 0x166   : > { %v1884_v12 = vpop.f32.mrb[32].mxu0 }
 0x167   : > { %v3247_v54 = vadd.f32 %v1851_v11, %v1771_v7  ;;  %v1885_v16 = vpop.f32.mrb[33].mxu0  ;;  %v1964_v20 = vpop.f32.mrb[32].mxu1 }
 0x168   : > { %v1886_v23 = vadd.f32 %v1885_v16, %v1884_v12  ;;  %v1965_v24 = vpop.f32.mrb[33].mxu1 }
 0x169   : > { %v1966_v15 = vadd.f32 %v1965_v24, %v1964_v20 }
 0x16a   : > { %v1051_v22 = vadd.f32 %v1886_v23, %v3217_v29  ;;  %v1887_v10 = vpop.f32.mrb[34].mxu0 }
 0x16b   : > { %v1888_v34 = vpop.f32.mrb[35].mxu0  ;;  %v1967_v25 = vpop.f32.mrb[34].mxu1 }
 0x16c   : > { %v1889_v26 = vadd.f32 %v1888_v34, %v1887_v10  ;;  %v1968_v46 = vpop.f32.mrb[35].mxu1  ;;  %v3250_v27 = vadd.f32 %v1966_v15, %v1051_v22 }
 0x16d   : > { %v1969_v30 = vadd.f32 %v1968_v46, %v1967_v25 }
 0x16e   : > { %v1056_v55 = vadd.f32 %v1889_v26, %v3219_v37  ;;  %v1890_v31 = vpop.f32.mrb[36].mxu0 }
 0x16f   : > { %v1891_v32 = vpop.f32.mrb[37].mxu0  ;;  %v1970_v3 = vpop.f32.mrb[36].mxu1 }
 0x170   : > { %v1892_v33 = vadd.f32 %v1891_v32, %v1890_v31  ;;  %v1971_v9 = vpop.f32.mrb[37].mxu1  ;;  %v3253_v41 = vadd.f32 %v1969_v30, %v1056_v55 }
 0x171   : > { %v1972_v43 = vadd.f32 %v1971_v9, %v1970_v3 }
 0x172   : > { %v1061_v29 = vadd.f32 %v1892_v33, %v3221_v52  ;;  %v1893_v50 = vpop.f32.mrb[38].mxu0 }
 0x173   : > { %v1894_v51 = vpop.f32.mrb[39].mxu0  ;;  %v1973_v53 = vpop.f32.mrb[38].mxu1 }
 0x174   : > { %v1895_v60 = vadd.f32 %v1894_v51, %v1893_v50  ;;  %v1974_v44 = vpop.f32.mrb[39].mxu1  ;;  %v3256_v45 = vadd.f32 %v1972_v43, %v1061_v29 }
 0x175   : > { %v1975_v17 = vadd.f32 %v1974_v44, %v1973_v53 }
 0x176   : > { %v1066_v37 = vadd.f32 %v1895_v60, %v3223_v63  ;;  %v1896_v42 = vpop.f32.mrb[40].mxu0 }
 0x177   : > { %v1897_v49 = vpop.f32.mrb[41].mxu0  ;;  %v1976_v61 = vpop.f32.mrb[40].mxu1 }
 0x178   : > { %v1898_v19 = vadd.f32 %v1897_v49, %v1896_v42  ;;  %v1977_v35 = vpop.f32.mrb[41].mxu1  ;;  %v3259_v21 = vadd.f32 %v1975_v17, %v1066_v37 }
 0x179   : > { %v1978_v59 = vadd.f32 %v1977_v35, %v1976_v61 }
 0x17a   : > { %v1071_v52 = vadd.f32 %v1898_v19, %v3225_v2  ;;  %v1899_v5 = vpop.f32.mrb[42].mxu0 }
 0x17b   : > { %v1900_v62 = vpop.f32.mrb[43].mxu0  ;;  %v1979_v13 = vpop.f32.mrb[42].mxu1 }
 0x17c   : > { %v1901_v39 = vadd.f32 %v1900_v62, %v1899_v5  ;;  %v1980_v40 = vpop.f32.mrb[43].mxu1  ;;  %v3262_v47 = vadd.f32 %v1978_v59, %v1071_v52 }
 0x17d   : > { %v1981_v56 = vadd.f32 %v1980_v40, %v1979_v13 }
 0x17e   : > { %v1076_v63 = vadd.f32 %v1901_v39, %v3227_v36  ;;  %v1902_v1 = vpop.f32.mrb[44].mxu0 }
 0x17f   : > { %v1903_v6 = vpop.f32.mrb[45].mxu0  ;;  %v1982_v7 = vpop.f32.mrb[44].mxu1 }
 0x180   : > { %v1904_v8 = vadd.f32 %v1903_v6, %v1902_v1  ;;  %v1983_v11 = vpop.f32.mrb[45].mxu1  ;;  %v3265_v12 = vadd.f32 %v1981_v56, %v1076_v63 }
 0x181   : > { %v1984_v16 = vadd.f32 %v1983_v11, %v1982_v7 }
 0x182   : > { %v1081_v2 = vadd.f32 %v1904_v8, %v3229_v4  ;;  %v1905_v20 = vpop.f32.mrb[46].mxu0 }
 0x183   : > { %v1906_v23 = vpop.f32.mrb[47].mxu0  ;;  %v1985_v24 = vpop.f32.mrb[46].mxu1 }
 0x184   : > { %v1907_v15 = vadd.f32 %v1906_v23, %v1905_v20  ;;  %v1986_v22 = vpop.f32.mrb[47].mxu1  ;;  %v3268_v10 = vadd.f32 %v1984_v16, %v1081_v2 }
 0x185   : > { %v1987_v34 = vadd.f32 %v1986_v22, %v1985_v24 }
 0x186   : > { %v1086_v36 = vadd.f32 %v1907_v15, %v3231_v14  ;;  %v1908_v25 = vpop.f32.mrb[48].mxu0 }
 0x187   : > { %v1909_v26 = vpop.f32.mrb[49].mxu0  ;;  %v1988_v46 = vpop.f32.mrb[48].mxu1 }
 0x188   : > { %v1910_v30 = vadd.f32 %v1909_v26, %v1908_v25  ;;  %v1989_v55 = vpop.f32.mrb[49].mxu1  ;;  %v3271_v31 = vadd.f32 %v1987_v34, %v1086_v36 }
 0x189   : > { %v1990_v32 = vadd.f32 %v1989_v55, %v1988_v46 }
 0x18a   : > { %v1091_v4 = vadd.f32 %v1910_v30, %v3233_v58  ;;  %v1911_v3 = vpop.f32.mrb[50].mxu0 }
 0x18b   : > { %v1912_v33 = vpop.f32.mrb[51].mxu0  ;;  %v1991_v9 = vpop.f32.mrb[50].mxu1 }
 0x18c   : > { %v1913_v43 = vadd.f32 %v1912_v33, %v1911_v3  ;;  %v1992_v29 = vpop.f32.mrb[51].mxu1  ;;  %v1236_v50 = vadd.f32 %v1990_v32, %v1091_v4 }
 0x18d   : > { %v1993_v51 = vadd.f32 %v1992_v29, %v1991_v9 }
 0x18e   : > { %v1096_v53 = vadd.f32 %v1913_v43, %v3235_v28  ;;  %v1914_v14 = vpop.f32.mrb[52].mxu0 }
 0x18f   : > { %v1915_v60 = vpop.f32.mrb[53].mxu0  ;;  %v1994_v44 = vpop.f32.mrb[52].mxu1 }
 0x190   : > { %v1916_v17 = vadd.f32 %v1915_v60, %v1914_v14  ;;  %v1995_v37 = vpop.f32.mrb[53].mxu1  ;;  %v1241_v42 = vadd.f32 %v1993_v51, %v1096_v53 }
 0x191   : > { %v1996_v49 = vadd.f32 %v1995_v37, %v1994_v44 }
 0x192   : > { %v1101_v61 = vadd.f32 %v1916_v17, %v3237_v38  ;;  %v1917_v19 = vpop.f32.mrb[54].mxu0 }
 0x193   : > { %v1918_v58 = vpop.f32.mrb[55].mxu0  ;;  %v1997_v35 = vpop.f32.mrb[54].mxu1 }
 0x194   : > { %v1919_v59 = vadd.f32 %v1918_v58, %v1917_v19  ;;  %v1998_v52 = vpop.f32.mrb[55].mxu1  ;;  %v1246_v5 = vadd.f32 %v1996_v49, %v1101_v61 }
 0x195   : > { %v1999_v62 = vadd.f32 %v1998_v52, %v1997_v35 }
 0x196   : > { %v1106_v13 = vadd.f32 %v1919_v59, %v3239_v57  ;;  %v1920_v39 = vpop.f32.mrb[56].mxu0 }
 0x197   : > { %v1921_v28 = vpop.f32.mrb[57].mxu0  ;;  %v2000_v40 = vpop.f32.mrb[56].mxu1 }
 0x198   : > { %v1922_v56 = vadd.f32 %v1921_v28, %v1920_v39  ;;  %v2001_v63 = vpop.f32.mrb[57].mxu1  ;;  %v1251_v1 = vadd.f32 %v1999_v62, %v1106_v13 }
 0x199   : > { %v2002_v6 = vadd.f32 %v2001_v63, %v2000_v40 }
 0x19a   : > { %v1111_v7 = vadd.f32 %v1922_v56, %v3241_v18  ;;  %v1923_v8 = vpop.f32.mrb[58].mxu0 }
 0x19b   : > { %v1924_v38 = vpop.f32.mrb[59].mxu0  ;;  %v2003_v11 = vpop.f32.mrb[58].mxu1 }
 0x19c   : > { %v1925_v16 = vadd.f32 %v1924_v38, %v1923_v8  ;;  %v2004_v2 = vpop.f32.mrb[59].mxu1  ;;  %v1256_v20 = vadd.f32 %v2002_v6, %v1111_v7 }
 0x19d   : > { %v2005_v23 = vadd.f32 %v2004_v2, %v2003_v11 }
 0x19e   : > { %v1116_v24 = vadd.f32 %v1925_v16, %v3243_v48  ;;  %v1926_v15 = vpop.f32.mrb[60].mxu0 }
 0x19f   : > { %v1927_v57 = vpop.f32.mrb[61].mxu0  ;;  %v2006_v22 = vpop.f32.mrb[60].mxu1 }
 0x1a0   : > { %v1928_v34 = vadd.f32 %v1927_v57, %v1926_v15  ;;  %v2007_v36 = vpop.f32.mrb[61].mxu1  ;;  %v1261_v25 = vadd.f32 %v2005_v23, %v1116_v24 }
 0x1a1   : > { %v2008_v26 = vadd.f32 %v2007_v36, %v2006_v22 }
 0x1a2   : > { %v1121_v46 = vadd.f32 %v1928_v34, %v3245_v0  ;;  %v1929_v30 = vpop.f32.mrb[62].mxu0 }
 0x1a3   : > { %v1930_v18 = vpop.f32.mrb[63].mxu0  ;;  %v2009_v55 = vpop.f32.mrb[62].mxu1 }
 0x1a4   : > { %v1931_v32 = vadd.f32 %v1930_v18, %v1929_v30  ;;  %v2010_v4 = vpop.f32.mrb[63].mxu1  ;;  %v3280_v3 = vadd.f32 %v2008_v26, %v1121_v46 }
 0x1a5   : > { %v2011_v33 = vadd.f32 %v2010_v4, %v2009_v55 }
 0x1a6   : > { %v1126_v48 = vadd.f32 %v1931_v32, %v3247_v54  ;;  %v2078_v9 = vpop.f32.mrb[64].mxu0 }
 0x1a7   : > { %v1346_v43 = vadd.f32 %v2078_v9, %v3253_v41  ;;  %v2090_v29 = vpop.f32.mrb[64].mxu1  ;;  %v1340_v51 = vpop.f32.mrb[65].mxu0 }
 0x1a8   : > { %v3284_v0 = vadd.f32 %v2090_v29, %v1241_v42  ;;  %v1341_v53 = vadd.f32 %v1340_v51, %v3250_v27  ;;  %v1380_v14 = vpop.f32.mrb[65].mxu1  ;;  %v1271_v60 = vadd.f32 %v2011_v33, %v1126_v48 }
 0x1a9   : > { %v1442_v44 = vmul.f32 %v1346_v43, %v1346_v43  ;;  %1480 = vst [vmem:[%s2434_s12 + $0x8] sm:$0xff] %v1346_v43  ;;  %v1381_v17 = vadd.f32 %v1380_v14, %v1236_v50 }
 0x1aa   : > { %1488 = vst [vmem:[%s2434_s12 + $0x48] sm:$0xff] %v3284_v0  ;;  %v1419_v54 = vadd.f32 %v1346_v43, %v1341_v53  ;;  %v1441_v37 = vmul.f32 %v1341_v53, %v1341_v53  ;;  %1479 = vst [vmem:[%s2434_s12] sm:$0xff] %v1341_v53  ;;  %v2081_v41 = vpop.f32.mrb[66].mxu0 }
 0x1ab   : > { %1487 = vst [vmem:[%s2434_s12 + $0x40] sm:$0xff] %v1381_v17  ;;  %v1356_v42 = vadd.f32 %v2081_v41, %v3259_v21  ;;  %v2093_v49 = vpop.f32.mrb[66].mxu1  ;;  %v1350_v27 = vpop.f32.mrb[67].mxu0  ;;  %v1449_v46 = vmul.f32 %v1381_v17, %v1381_v17 }
 0x1ac   : > { %v1457_v61 = vadd.f32 %v1442_v44, %v1441_v37  ;;  %v1396_v19 = vadd.f32 %v2093_v49, %v1251_v1  ;;  %v1351_v58 = vadd.f32 %v1350_v27, %v3256_v45  ;;  %v1390_v35 = vpop.f32.mrb[67].mxu1 }
 0x1ad   : > { %1482 = vst [vmem:[%s2434_s12 + $0x18] sm:$0xff] %v1356_v42  ;;  %v1391_v50 = vadd.f32 %v1390_v35, %v1246_v5  ;;  %v1444_v13 = vmul.f32 %v1356_v42, %v1356_v42 }
 0x1ae   : > { %1490 = vst [vmem:[%s2434_s12 + $0x58] sm:$0xff] %v1396_v19  ;;  %v1420_v59 = vadd.f32 %v1419_v54, %v1351_v58  ;;  %v1443_v52 = vmul.f32 %v1351_v58, %v1351_v58  ;;  %1481 = vst [vmem:[%s2434_s12 + $0x10] sm:$0xff] %v1351_v58  ;;  %v2084_v62 = vpop.f32.mrb[68].mxu0  ;;  %v1452_v48 = vmul.f32 %v1396_v19, %v1396_v19 }
 0x1af   : > { %1489 = vst [vmem:[%s2434_s12 + $0x50] sm:$0xff] %v1391_v50  ;;  %v1366_v21 = vadd.f32 %v2084_v62, %v3265_v12  ;;  %v2096_v39 = vpop.f32.mrb[68].mxu1  ;;  %v1360_v28 = vpop.f32.mrb[69].mxu0  ;;  %v1451_v4 = vmul.f32 %v1391_v50, %v1391_v50 }
 0x1b0   : > { %v1458_v40 = vadd.f32 %v1457_v61, %v1443_v52  ;;  %v1406_v45 = vadd.f32 %v2096_v39, %v1261_v25  ;;  %v1361_v56 = vadd.f32 %v1360_v28, %v3262_v47  ;;  %v1421_v5 = vadd.f32 %v1420_v59, %v1356_v42  ;;  %v1400_v63 = vpop.f32.mrb[69].mxu1 }
 0x1b1   : > { %1484 = vst [vmem:[%s2434_s12 + $0x28] sm:$0xff] %v1366_v21  ;;  %v1401_v1 = vadd.f32 %v1400_v63, %v1256_v20  ;;  %v1446_v12 = vmul.f32 %v1366_v21, %v1366_v21 }
 0x1b2   : > { %1492 = vst [vmem:[%s2434_s12 + $0x68] sm:$0xff] %v1406_v45  ;;  %v1422_v6 = vadd.f32 %v1421_v5, %v1361_v56  ;;  %v1445_v7 = vmul.f32 %v1361_v56, %v1361_v56  ;;  %v1459_v8 = vadd.f32 %v1458_v40, %v1444_v13  ;;  %1483 = vst [vmem:[%s2434_s12 + $0x20] sm:$0xff] %v1361_v56  ;;  %v2087_v38 = vpop.f32.mrb[70].mxu0 }
 0x1b3   : > { %1491 = vst [vmem:[%s2434_s12 + $0x60] sm:$0xff] %v1401_v1  ;;  %v1376_v11 = vadd.f32 %v2087_v38, %v3271_v31  ;;  %v2099_v16 = vpop.f32.mrb[70].mxu1  ;;  %v1370_v47 = vpop.f32.mrb[71].mxu0  ;;  %v1453_v29 = vmul.f32 %v1401_v1, %v1401_v1  ;;  %v1454_v14 = vmul.f32 %v1406_v45, %v1406_v45 }
 0x1b4   : > { %v1460_v2 = vadd.f32 %v1459_v8, %v1445_v7  ;;  %v1416_v23 = vadd.f32 %v2099_v16, %v1271_v60  ;;  %v1371_v20 = vadd.f32 %v1370_v47, %v3268_v10  ;;  %v1423_v24 = vadd.f32 %v1422_v6, %v1366_v21  ;;  %v1410_v15 = vpop.f32.mrb[71].mxu1 }
 0x1b5   : > { %1486 = vst [vmem:[%s2434_s12 + $0x38] sm:$0xff] %v1376_v11  ;;  %v1411_v57 = vadd.f32 %v1410_v15, %v3280_v3  ;;  %v1448_v25 = vmul.f32 %v1376_v11, %v1376_v11  ;;  %v1450_v10 = vmul.f32 %v3284_v0, %v3284_v0 }
 0x1b6   : > { %1494 = vst [vmem:[%s2434_s12 + $0x78] sm:$0xff] %v1416_v23  ;;  %v1424_v22 = vadd.f32 %v1423_v24, %v1371_v20  ;;  %v1447_v34 = vmul.f32 %v1371_v20, %v1371_v20  ;;  %v1461_v36 = vadd.f32 %v1460_v2, %v1446_v12  ;;  %1485 = vst [vmem:[%s2434_s12 + $0x30] sm:$0xff] %v1371_v20 }
 0x1b7   : > { %1493 = vst [vmem:[%s2434_s12 + $0x70] sm:$0xff] %v1411_v57  ;;  %v1455_v54 = vmul.f32 %v1411_v57, %v1411_v57  ;;  %v1456_v41 = vmul.f32 %v1416_v23, %v1416_v23 }
 0x1b8   : > { %v1425_v26 = vadd.f32 %v1424_v22, %v1376_v11  ;;  %v1462_v31 = vadd.f32 %v1461_v36, %v1447_v34 }
 0x1ba   : > { %v1426_v30 = vadd.f32 %v1425_v26, %v1381_v17  ;;  %v1463_v18 = vadd.f32 %v1462_v31, %v1448_v25 }
 0x1bc   : > { %v1427_v55 = vadd.f32 %v1426_v30, %v3284_v0  ;;  %v1464_v32 = vadd.f32 %v1463_v18, %v1449_v46 }
 0x1be   : > { %v1465_v3 = vadd.f32 %v1464_v32, %v1450_v10  ;;  %v1428_v33 = vadd.f32 %v1427_v55, %v1391_v50 }
 0x1c0   : > { %v1429_v9 = vadd.f32 %v1428_v33, %v1396_v19  ;;  %v1466_v43 = vadd.f32 %v1465_v3, %v1451_v4 }
 0x1c2   : > { %v1430_v51 = vadd.f32 %v1429_v9, %v1401_v1  ;;  %v1467_v53 = vadd.f32 %v1466_v43, %v1452_v48 }
 0x1c4   : > { %v1431_v60 = vadd.f32 %v1430_v51, %v1406_v45  ;;  %v1468_v44 = vadd.f32 %v1467_v53, %v1453_v29 }
 0x1c6   : > { %v1432_v17 = vadd.f32 %v1431_v60, %v1411_v57  ;;  %v1469_v37 = vadd.f32 %v1468_v44, %v1454_v14 }
 0x1c8   : > { %v1433_v42 = vadd.f32 %v1432_v17, %v1416_v23  ;;  %v1470_v0 = vadd.f32 %v1469_v37, %v1455_v54 }
 0x1ca   : > { %v1434_v49 = vrot.slane %v1433_v42, 4  ;;  %v1471_v27 = vadd.f32 %v1470_v0, %v1456_v41 }
 0x1cc   : > { %v1435_v61 = vadd.f32 %v1434_v49, %v1433_v42  ;;  %v1472_v58 = vrot.slane %v1471_v27, 4 }
 0x1ce   : > { %v1436_v19 = vrot.slane %v1435_v61, 2  ;;  %v1473_v35 = vadd.f32 %v1472_v58, %v1471_v27 }
 0x1d0   : > { %v1437_v50 = vadd.f32 %v1436_v19, %v1435_v61  ;;  %v1474_v59 = vrot.slane %v1473_v35, 2 }
 0x1d2   : > { %v1438_v52 = vrot.slane %v1437_v50, 1  ;;  %v1475_v62 = vadd.f32 %v1474_v59, %v1473_v35 }
 0x1d4   : > { %v1439_v13 = vadd.f32 %v1438_v52, %v1437_v50  ;;  %v1476_v21 = vrot.slane %v1475_v62, 1 }
 0x1d6   : > { %1440 = vst [vmem:[%s203_s5] sm:$0x1] %v1439_v13  ;;  %v1477_v39 = vadd.f32 %v1476_v21, %v1475_v62 }
 0x1d8   : > { %1478 = vst [vmem:[%s210_s9] sm:$0x1] %v1477_v39 }
 0x1d9 PF: > { %s15_s19 = sadd.s32 1, %s2356_s19   ;;  %s3344_s15 = smov %s2348_s17 }
 0x1da   : > { %p12_p7 = scmp.ge.s32.totalorder %s15_s19, 6   ;;  %s3345_s16 = smov %s2352_s18 }
 0x1db   : > { %s3346_s17 = smov %s3349_s20  ;;  %s3347_s18 = smov %s3353_s21 }
 0x1dc   :  { %14 = sbr.rel (!%p12_p7) target bundleno = 3 (0x3), region = 128 }

</bundles_post_ra>
